<compile_context>
chip_gen: v5e
topology: v5e:2x2
jax: 0.10.0
libtpu: 0.0.40
codegen_flags: <defaults>
</compile_context>

<pallas_src>
import functools
import math

import jax
import jax.numpy as jnp
from jax import lax
from jax.experimental import pallas as pl
from jax.experimental.pallas import tpu as pltpu


def _round_up(x, m):
    return -(-x // m) * m


def _tokenizer_fused_kernel(x_ref, w_ref, o_ref, ybuf, *,
                            kh_sz, kw_sz, ho, wo,
                            pool_k, pool_s, pool_p, po_h, po_w,
                            lpad, h_pad, w_pad):
    """Fused depthwise-sep conv (stride 1) + 2-D max pool for `bt` images.

    x_ref : (bt, H+2p, W+2p, Cin)     zero-padded NHWC input block
    w_ref : (KH*KW*Cin, Cout)         folded (depthwise*pointwise) im2col weight
    o_ref : (bt, po_h*po_w, Cout)     pooled + flattened + transposed output
    ybuf  : (bt, h_pad, w_pad, Cout)  VMEM scratch: -inf framed conv output
    """
    bt = x_ref.shape[0]
    cin = x_ref.shape[-1]
    cout = w_ref.shape[-1]

    # --- 1) im2col: KH*KW shifted window reads concatenated on the lane axis.
    taps = []
    for kh in range(kh_sz):
        for kw in range(kw_sz):
            taps.append(x_ref[:, kh:kh + ho, kw:kw + wo, :])        # (bt, ho, wo, cin)
    patches = jnp.concatenate(taps, axis=-1)                        # (bt, ho, wo, K)
    # free reshape (wo is a multiple of 8): M = bt*ho*wo rows for the MXU.
    patches = patches.reshape(bt * ho * wo, kh_sz * kw_sz * cin)

    # --- 2) fused depthwise+pointwise conv as ONE MXU matmul (f32, K=27, N=cout).
    y = jnp.dot(patches, w_ref[...], preferred_element_type=jnp.float32)
    y = y.reshape(bt, ho, wo, cout)                                 # free split

    # --- 3) stage the conv output in a -inf framed scratch so both pooling
    #        stages are plain (strided) slab reads with exact reduce_window
    #        (-inf padded) semantics.  The body store is sublane-aligned
    #        because lpad is a multiple of 8.
    ybuf[...] = jnp.full(ybuf.shape, -jnp.inf, dtype=ybuf.dtype)
    ybuf[:, pool_p:pool_p + ho, lpad:lpad + wo, :] = y

    # --- 4) width max-pool: pool_k strided slab reads + whole-slab maxima.
    wmax = None
    for k in range(pool_k):
        s = ybuf[:, :, pl.ds(lpad - pool_p + k, po_w, stride=pool_s), :]
        wmax = s if wmax is None else jnp.maximum(wmax, s)          # (bt, h_pad, po_w, cout)

    # --- 5) height max-pool straight from registers (no second scratch):
    #        split the padded row axis into (h_pad//2, 2) so every tap is a
    #        contiguous leading-dim slice (pool_s == 2).
    w5 = wmax.reshape(bt, h_pad // 2, 2, po_w, cout)                # leading-dim split: free
    ev = w5[:, :, 0]
    od = w5[:, :, 1]
    hmax = None
    for k in range(pool_k):
        src = ev if k % 2 == 0 else od
        s = src[:, k // 2:k // 2 + po_h]                            # (bt, po_h, po_w, cout)
        hmax = s if hmax is None else jnp.maximum(hmax, s)

    # --- 6) Flatten(2,3) + transpose(-2,-1): merging (po_h, po_w) is layout
    #        free (po_w is a full sublane group); one store of (bt, seq, cout).
    o_ref[...] = hmax.reshape(bt, po_h * po_w, cout).astype(o_ref.dtype)


def _pick_batch_tile(batch):
    """Largest divisor of `batch` that still leaves >= 2 grid steps (keeps both
    v7x TensorCores busy on the 'parallel' axis), capped for VMEM headroom."""
    cap = 8
    best = 1
    for bt in range(1, min(batch, cap) + 1):
        if batch % bt == 0 and (batch // bt >= 2 or batch < 2):
            best = bt
    return best


def tokenizer_forward_pallas(x_nchw, dw_weight, pw_weight, *,
                             kernel_size=3, stride=1, padding=1,
                             pool_k=3, pool_s=2, pool_p=1):
    """TokenizerCustom.forward (n_conv_layers=1, activation=None, max_pool=True).

    x_nchw   : (B, Cin, H, W)        PyTorch NCHW input
    dw_weight: (Cin, 1, KH, KW)      torch depthwise conv weight
    pw_weight: (Cout, Cin, 1, 1)     torch pointwise conv weight
    returns  : (B, seq_len, Cout)
    """
    # TODO(synk): only stride-1 depthwise conv is implemented in the kernel.
    assert stride == 1
    assert pool_s == 2                      # even/odd height-pool split assumes this
    assert pool_p <= pool_k // 2            # torch MaxPool2d constraint

    B, cin, H, W = x_nchw.shape
    cout = pw_weight.shape[0]
    kh = kw = kernel_size

    ho = (H + 2 * padding - kh) // stride + 1
    wo = (W + 2 * padding - kw) // stride + 1
    po_h = (ho + 2 * pool_p - pool_k) // pool_s + 1
    po_w = (wo + 2 * pool_p - pool_k) // pool_s + 1
    seq = po_h * po_w

    # -inf framed conv-output scratch geometry (sublane-aligned body on width).
    lpad = _round_up(max(pool_p, 1), 8)
    w_pad = _round_up(max(lpad + wo,
                          lpad - pool_p + pool_s * (po_w - 1) + pool_k), 8)
    h_pad = _round_up(max(ho + 2 * pool_p,
                          pool_s * (po_h - 1) + pool_k), 2)

    bt = _pick_batch_tile(B)

    # --- glue: NCHW -> NHWC + conv zero-pad.  Channels stay at cin (=3): block
    # last two dims equal the full array dims, so no 3->8 HBM zero-padding.
    x = jnp.transpose(x_nchw, (0, 2, 3, 1)).astype(jnp.float32)
    x = jnp.pad(x, ((0, 0), (padding, padding), (padding, padding), (0, 0)))
    hp, wp = H + 2 * padding, W + 2 * padding

    # --- glue: fold depthwise into pointwise -> w[kh,kw,c,o] = wd[c,kh,kw]*wp[o,c]
    # (exact in f32: conv_pw(conv_dw(x)) == im2col(x) @ w_comb).
    wd = dw_weight[:, 0, :, :].astype(jnp.float32)                  # (cin, kh, kw)
    wpw = pw_weight[:, :, 0, 0].astype(jnp.float32)                 # (cout, cin)
    w_comb = jnp.einsum('ckl,oc->klco', wd, wpw)                    # (kh, kw, cin, cout)
    w_comb = w_comb.reshape(kh * kw * cin, cout)                    # (K=27, cout)

    kernel = functools.partial(
        _tokenizer_fused_kernel, kh_sz=kh, kw_sz=kw, ho=ho, wo=wo,
        pool_k=pool_k, pool_s=pool_s, pool_p=pool_p, po_h=po_h, po_w=po_w,
        lpad=lpad, h_pad=h_pad, w_pad=w_pad)

    # TODO(synk): add an H-tiling grid axis (overlapping kh-1 row halo, pool-
    # stride-aligned tile boundaries, per-tile scratch) before running at
    # production image sizes (e.g. 224x224) so the per-step working set stays
    # under v7x's 64 MiB VMEM; at the sizes exercised here one image fits easily.
    out = pl.pallas_call(
        kernel,
        out_shape=jax.ShapeDtypeStruct((B, seq, cout), jnp.float32),
        grid=(B // bt,),
        in_specs=[
            pl.BlockSpec((bt, hp, wp, cin), lambda i: (i, 0, 0, 0)),
            pl.BlockSpec((kh * kw * cin, cout), lambda i: (0, 0)),
        ],
        out_specs=pl.BlockSpec((bt, seq, cout), lambda i: (i, 0, 0)),
        scratch_shapes=[
            pltpu.VMEM((bt, h_pad, w_pad, cout), jnp.float32),
        ],
        compiler_params=pltpu.CompilerParams(
            dimension_semantics=("parallel",),
            vmem_limit_bytes=48 * 1024 * 1024,
        ),
    )(x, w_comb)
    return out


def reference_forward(x_nchw, dw_weight, pw_weight):
    """Pure-JAX reference (matches the PyTorch module semantics)."""
    cin = x_nchw.shape[1]
    y = lax.conv_general_dilated(
        x_nchw, dw_weight, window_strides=(1, 1), padding=((1, 1), (1, 1)),
        feature_group_count=cin, dimension_numbers=('NCHW', 'OIHW', 'NCHW'),
        precision=lax.Precision.HIGHEST)
    y = lax.conv_general_dilated(
        y, pw_weight, window_strides=(1, 1), padding='VALID',
        dimension_numbers=('NCHW', 'OIHW', 'NCHW'),
        precision=lax.Precision.HIGHEST)
    y = lax.reduce_window(y, -jnp.inf, lax.max,
                          (1, 1, 3, 3), (1, 1, 2, 2),
                          ((0, 0), (0, 0), (1, 1), (1, 1)))
    B, C, Hh, Ww = y.shape
    return jnp.transpose(y.reshape(B, C, Hh * Ww), (0, 2, 1))


if __name__ == "__main__":
    B, Cin, H, W = 2, 3, 16, 16
    Cout = 64
    key = jax.random.PRNGKey(0)
    k1, k2, k3 = jax.random.split(key, 3)

    # kaiming_normal_ (fan_in mode, gain=sqrt(2)) as in TokenizerCustom.init_weight
    dw_weight = jax.random.normal(k1, (Cin, 1, 3, 3), jnp.float32) * math.sqrt(2.0 / (1 * 3 * 3))
    pw_weight = jax.random.normal(k2, (Cout, Cin, 1, 1), jnp.float32) * math.sqrt(2.0 / (Cin * 1 * 1))
    x = jax.random.normal(k3, (B, Cin, H, W), jnp.float32)

    out = tokenizer_forward_pallas(x, dw_weight, pw_weight,
                                   kernel_size=3, stride=1, padding=1)
    out = jax.block_until_ready(out)
    assert out.shape == (B, 8 * 8, Cout), out.shape

    ref = reference_forward(x, dw_weight, pw_weight)
    max_err = float(jnp.max(jnp.abs(out - ref)))
    assert jnp.allclose(out, ref, rtol=1e-3, atol=1e-3), max_err

    print("KERNEL_OK")
</pallas_src>

<mosaic_0001>
module attributes {stable_mosaic.version = 11 : i64} {
  func.func @_tokenizer_fused_kernel(%arg0: i32, %arg1: memref<1x18x18x3xf32, #tpu.memory_space<vmem>>, %arg2: memref<27x64xf32, #tpu.memory_space<vmem>>, %arg3: memref<1x64x64xf32, #tpu.memory_space<vmem>>, %arg4: memref<1x18x24x64xf32, #tpu.memory_space<vmem>>) attributes {dimension_semantics = [#tpu.dimension_semantics<parallel>], iteration_bounds = array<i64: 2>, scalar_prefetch = 0 : i64, scratch_operands = 1 : i64, tpu.core_type = #tpu.core_type<tc>, window_params = [{transform_indices = @transform_0, window_bounds = array<i64: 1, 18, 18, 3>}, {pipeline_mode = #tpu.pipeline_mode<synchronous>, transform_indices = @transform_1, window_bounds = array<i64: 27, 64>}, {transform_indices = @transform_2, window_bounds = array<i64: 1, 64, 64>}]} {
    %c0 = arith.constant 0 : index
    %c0_0 = arith.constant 0 : index
    %c0_1 = arith.constant 0 : index
    %c0_2 = arith.constant 0 : index
    %0 = vector.load %arg1[%c0, %c0_0, %c0_1, %c0_2] : memref<1x18x18x3xf32, #tpu.memory_space<vmem>>, vector<1x16x16x3xf32>
    %c0_3 = arith.constant 0 : index
    %c0_4 = arith.constant 0 : index
    %c1 = arith.constant 1 : index
    %c0_5 = arith.constant 0 : index
    %1 = vector.load %arg1[%c0_3, %c0_4, %c1, %c0_5] : memref<1x18x18x3xf32, #tpu.memory_space<vmem>>, vector<1x16x16x3xf32>
    %c0_6 = arith.constant 0 : index
    %c0_7 = arith.constant 0 : index
    %c2 = arith.constant 2 : index
    %c0_8 = arith.constant 0 : index
    %2 = vector.load %arg1[%c0_6, %c0_7, %c2, %c0_8] : memref<1x18x18x3xf32, #tpu.memory_space<vmem>>, vector<1x16x16x3xf32>
    %c0_9 = arith.constant 0 : index
    %c1_10 = arith.constant 1 : index
    %c0_11 = arith.constant 0 : index
    %c0_12 = arith.constant 0 : index
    %3 = vector.load %arg1[%c0_9, %c1_10, %c0_11, %c0_12] : memref<1x18x18x3xf32, #tpu.memory_space<vmem>>, vector<1x16x16x3xf32>
    %c0_13 = arith.constant 0 : index
    %c1_14 = arith.constant 1 : index
    %c1_15 = arith.constant 1 : index
    %c0_16 = arith.constant 0 : index
    %4 = vector.load %arg1[%c0_13, %c1_14, %c1_15, %c0_16] : memref<1x18x18x3xf32, #tpu.memory_space<vmem>>, vector<1x16x16x3xf32>
    %c0_17 = arith.constant 0 : index
    %c1_18 = arith.constant 1 : index
    %c2_19 = arith.constant 2 : index
    %c0_20 = arith.constant 0 : index
    %5 = vector.load %arg1[%c0_17, %c1_18, %c2_19, %c0_20] : memref<1x18x18x3xf32, #tpu.memory_space<vmem>>, vector<1x16x16x3xf32>
    %c0_21 = arith.constant 0 : index
    %c2_22 = arith.constant 2 : index
    %c0_23 = arith.constant 0 : index
    %c0_24 = arith.constant 0 : index
    %6 = vector.load %arg1[%c0_21, %c2_22, %c0_23, %c0_24] : memref<1x18x18x3xf32, #tpu.memory_space<vmem>>, vector<1x16x16x3xf32>
    %c0_25 = arith.constant 0 : index
    %c2_26 = arith.constant 2 : index
    %c1_27 = arith.constant 1 : index
    %c0_28 = arith.constant 0 : index
    %7 = vector.load %arg1[%c0_25, %c2_26, %c1_27, %c0_28] : memref<1x18x18x3xf32, #tpu.memory_space<vmem>>, vector<1x16x16x3xf32>
    %c0_29 = arith.constant 0 : index
    %c2_30 = arith.constant 2 : index
    %c2_31 = arith.constant 2 : index
    %c0_32 = arith.constant 0 : index
    %8 = vector.load %arg1[%c0_29, %c2_30, %c2_31, %c0_32] : memref<1x18x18x3xf32, #tpu.memory_space<vmem>>, vector<1x16x16x3xf32>
    %9 = tpu.concatenate %0, %1, %2, %3, %4, %5, %6, %7, %8 in 3 : vector<1x16x16x3xf32>, vector<1x16x16x3xf32>, vector<1x16x16x3xf32>, vector<1x16x16x3xf32>, vector<1x16x16x3xf32>, vector<1x16x16x3xf32>, vector<1x16x16x3xf32>, vector<1x16x16x3xf32>, vector<1x16x16x3xf32> -> vector<1x16x16x27xf32>
    %10 = vector.shape_cast %9 : vector<1x16x16x27xf32> to vector<256x27xf32>
    %c0_33 = arith.constant 0 : index
    %c0_34 = arith.constant 0 : index
    %11 = vector.load %arg2[%c0_33, %c0_34] : memref<27x64xf32, #tpu.memory_space<vmem>>, vector<27x64xf32>
    %cst = arith.constant dense<0.000000e+00> : vector<256x64xf32>
    %12 = tpu.matmul %10, %11, %cst {dimension_numbers = #tpu.dot_dimension_numbers<[1], [0], [0], [1], [0, 0, 1, 1], [], []>} : vector<256x27xf32>, vector<27x64xf32>, vector<256x64xf32> -> vector<256x64xf32>
    %13 = vector.shape_cast %12 : vector<256x64xf32> to vector<1x16x16x64xf32>
    %cst_35 = arith.constant 0xFF800000 : f32
    %14 = vector.broadcast %cst_35 : f32 to vector<1x18x24x64xf32>
    %c0_36 = arith.constant 0 : index
    %c0_37 = arith.constant 0 : index
    %c0_38 = arith.constant 0 : index
    %c0_39 = arith.constant 0 : index
    %15 = vector.load %arg4[%c0_36, %c0_37, %c0_38, %c0_39] : memref<1x18x24x64xf32, #tpu.memory_space<vmem>>, vector<1x18x24x64xf32>
    tpu.vector_store %arg4[%c0_36, %c0_37, %c0_38, %c0_39], %14 {strides = array<i32>} : memref<1x18x24x64xf32, #tpu.memory_space<vmem>>, vector<1x18x24x64xf32>,
    %c0_40 = arith.constant 0 : index
    %c1_41 = arith.constant 1 : index
    %c8 = arith.constant 8 : index
    %c0_42 = arith.constant 0 : index
    %16 = vector.load %arg4[%c0_40, %c1_41, %c8, %c0_42] : memref<1x18x24x64xf32, #tpu.memory_space<vmem>>, vector<1x16x16x64xf32>
    tpu.vector_store %arg4[%c0_40, %c1_41, %c8, %c0_42], %13 {strides = array<i32>} : memref<1x18x24x64xf32, #tpu.memory_space<vmem>>, vector<1x16x16x64xf32>,
    %c0_43 = arith.constant 0 : index
    %c0_44 = arith.constant 0 : index
    %c7 = arith.constant 7 : index
    %c0_45 = arith.constant 0 : index
    %17 = tpu.strided_load %arg4[%c0_43, %c0_44, %c7, %c0_45] {strides = array<i32: 1, 1, 2, 1>} : memref<1x18x24x64xf32, #tpu.memory_space<vmem>>, vector<1x18x8x64xf32>
    %c0_46 = arith.constant 0 : index
    %c0_47 = arith.constant 0 : index
    %c8_48 = arith.constant 8 : index
    %c0_49 = arith.constant 0 : index
    %18 = tpu.strided_load %arg4[%c0_46, %c0_47, %c8_48, %c0_49] {strides = array<i32: 1, 1, 2, 1>} : memref<1x18x24x64xf32, #tpu.memory_space<vmem>>, vector<1x18x8x64xf32>
    %19 = arith.maximumf %17, %18 : vector<1x18x8x64xf32>
    %c0_50 = arith.constant 0 : index
    %c0_51 = arith.constant 0 : index
    %c9 = arith.constant 9 : index
    %c0_52 = arith.constant 0 : index
    %20 = tpu.strided_load %arg4[%c0_50, %c0_51, %c9, %c0_52] {strides = array<i32: 1, 1, 2, 1>} : memref<1x18x24x64xf32, #tpu.memory_space<vmem>>, vector<1x18x8x64xf32>
    %21 = arith.maximumf %19, %20 : vector<1x18x8x64xf32>
    %22 = vector.shape_cast %21 : vector<1x18x8x64xf32> to vector<1x9x2x8x64xf32>
    %23 = vector.extract_strided_slice %22 {offsets = [0, 0, 0, 0, 0], sizes = [1, 9, 1, 8, 64], strides = [1, 1, 1, 1, 1]} : vector<1x9x2x8x64xf32> to vector<1x9x1x8x64xf32>
    %24 = vector.shape_cast %23 : vector<1x9x1x8x64xf32> to vector<1x9x8x64xf32>
    %25 = vector.extract_strided_slice %22 {offsets = [0, 0, 1, 0, 0], sizes = [1, 9, 1, 8, 64], strides = [1, 1, 1, 1, 1]} : vector<1x9x2x8x64xf32> to vector<1x9x1x8x64xf32>
    %26 = vector.shape_cast %25 : vector<1x9x1x8x64xf32> to vector<1x9x8x64xf32>
    %27 = vector.extract_strided_slice %24 {offsets = [0, 0, 0, 0], sizes = [1, 8, 8, 64], strides = [1, 1, 1, 1]} : vector<1x9x8x64xf32> to vector<1x8x8x64xf32>
    %28 = vector.extract_strided_slice %26 {offsets = [0, 0, 0, 0], sizes = [1, 8, 8, 64], strides = [1, 1, 1, 1]} : vector<1x9x8x64xf32> to vector<1x8x8x64xf32>
    %29 = arith.maximumf %27, %28 : vector<1x8x8x64xf32>
    %30 = vector.extract_strided_slice %24 {offsets = [0, 1, 0, 0], sizes = [1, 8, 8, 64], strides = [1, 1, 1, 1]} : vector<1x9x8x64xf32> to vector<1x8x8x64xf32>
    %31 = arith.maximumf %29, %30 : vector<1x8x8x64xf32>
    %32 = vector.shape_cast %31 : vector<1x8x8x64xf32> to vector<1x64x64xf32>
    %c0_53 = arith.constant 0 : index
    %c0_54 = arith.constant 0 : index
    %c0_55 = arith.constant 0 : index
    %33 = vector.load %arg3[%c0_53, %c0_54, %c0_55] : memref<1x64x64xf32, #tpu.memory_space<vmem>>, vector<1x64x64xf32>
    tpu.vector_store %arg3[%c0_53, %c0_54, %c0_55], %32 {strides = array<i32>} : memref<1x64x64xf32, #tpu.memory_space<vmem>>, vector<1x64x64xf32>,
    return
  }
  func.func @transform_0(%arg0: i32) -> (i32, i32, i32, i32) {
    %c0_i32 = arith.constant 0 : i32
    %c0_i32_0 = arith.constant 0 : i32
    %c0_i32_1 = arith.constant 0 : i32
    %c0_i32_2 = arith.constant 0 : i32
    return %arg0, %c0_i32, %c0_i32_0, %c0_i32_1 : i32, i32, i32, i32
  }
  func.func @transform_1(%arg0: i32) -> (i32, i32) {
    %c0_i32 = arith.constant 0 : i32
    %c0_i32_0 = arith.constant 0 : i32
    %c0_i32_1 = arith.constant 0 : i32
    return %c0_i32, %c0_i32_0 : i32, i32
  }
  func.func @transform_2(%arg0: i32) -> (i32, i32, i32) {
    %c0_i32 = arith.constant 0 : i32
    %c0_i32_0 = arith.constant 0 : i32
    %c0_i32_1 = arith.constant 0 : i32
    return %arg0, %c0_i32, %c0_i32_0 : i32, i32, i32
  }
}

</mosaic_0001>

<bundles_post_ra>
// kernel: tpu_custom_call.1
= control target key start
LH: loop header
LB: loop body
LE: loop exit
PB: predicated region body
PF: predicated region fallthrough
CT: control target
= control target key end

     0   :  { %7 = vsyncpa [#allocation4], 0  ;;  %s4567_s0 = inlined_call_operand.vmem [shape: f32[2,18,18,3], index: 0, kind: input, shape index: {}]   ;;  %s4568_s1 = inlined_call_operand.vmem [shape: f32[27,64], index: 1, kind: input, shape index: {}]   ;;  %s4569_s2 = inlined_call_operand.hbm [shape: f32[2,64,64], index: 2, kind: output, shape index: {}]  }
   0x1   :  { %9 = vsyncpa [#allocation4 + $0x1], 0  ;;  %s2658_s9 = smov 0   ;;  %s2660_s10 = smov 0  }
   0x2   :  { %s2662_s11 = smov 0   ;;  %s2664_s12 = smov 0  }
   0x3 LB: > { %s2679_s13 = sadd.s32 4294967295, %s2630_s12   ;;  %s2264_s14 = sadd.s32 4294967294, %s2630_s12   ;;  %s2630_s12 = sphi %s2664_s12, %s4845_s12   ;;  %s2626_s11 = sphi %s2662_s11, %s4844_s11   ;;  %s2622_s10 = sphi %s2660_s10, %s4843_s10   ;;  %s2618_s9 = sphi %s2658_s9, %s4842_s9  }
   0x4   : > { %s2683_s15 = sadd.s32 1, %s2630_s12   ;;  %s69_s16 = sadd.s32 1, %s2626_s11 }
   0x5   : > { %s66_s17 = ssub.s32 %s2630_s12, %s2683_s15  ;;  %p79_p0 = scmp.ne.s32.totalorder %s2626_s11, %s2622_s10 }
   0x6   : > { %p67_p1 = scmp.eq.s32.totalorder %s66_s17, 0  ;;  %p80_p2 = scmp.eq.s32.totalorder %s2679_s13, 1 }
   0x7   : > { %p85_p3 = scmp.ne.s32.totalorder %s2622_s10, %s2618_s9  ;;  %p86_p4 = scmp.eq.s32.totalorder %s2264_s14, 1 }
   0x8   : > { %s2694_s18 = scalar_select %p67_p1, %s2626_s11, %s69_s16  }
   0x9   : > { %p2696_p5 = por %p80_p2, %p79_p0  ;;  %p2700_p6 = por %p86_p4, %p85_p3 }
   0xa   : > { %p2267_p7 = scmp.ge.s32.totalorder %s2630_s12, 1  ;;  %p115_p8 = scmp.lt.s32.totalorder %s2630_s12, 3 }
   0xc   : > { %p116_p9 = pnand %p2267_p7, %p115_p8 }
   0xe   : > { %119 = sbr.rel (%p116_p9) target bundleno = 970 (0x3ca), region = 28 }
  0x13   : > { %p137_p10 = scmp.lt.s32.totalorder %s2679_s13, 1  ;;  %s2632_s26 = smov 3   ;;  %vm1456_vm0 = vcmask 23552   ;;  %vm1489_vm1 = vcmask 48128   ;;  %vm1522_vm2 = vcmask 72704   ;;  %vm1555_vm3 = vcmask 97280  }
  0x14   : > { %s2633_s27 = smov 6   ;;  %s2634_s28 = smov 9   ;;  %vm1588_vm4 = vcmask 121856   ;;  %vm1621_vm5 = vcmask 146432   ;;  %vm1821_vm6 = vcmask 1042432   ;;  %vm1654_vm7 = vcmask 171008  }
  0x15   : > { %s138_s21 = scalar_select %p137_p10, %s2679_s13, 1  ;;  %vm1687_vm8 = vcmask 195584   ;;  %vm1724_vm9 = vcmask 220160   ;;  %vm1938_vm10 = vcmask 523264  }
  0x16   : > { %s2635_s29 = smov 12   ;;  %s2636_s30 = smov 15  }
  0x17   : > { %s2513_s22 = smul.u32 432, %s138_s21  ;;  %s2637_s3 = smov 18  }
  0x18   : > { %s2638_s4 = smov 21   ;;  %s2639_s5 = smov 24  }
  0x19   : > { %s2711_s25 = scalar_lea.vmem %s4567_s0, %s2513_s22  ;;  %s134_s23 = sand.u32 1, %s2622_s10  }
  0x1a   : > { %v2714_v0 = vld [vmem:[%s2711_s25 + $0x31] sm:$0xff]  ;;  %v2717_v1 = vld [vmem:[%s2711_s25 + $0x19] sm:$0xff]  ;;  %v174_v2 = vld [vmem:[%s2711_s25 + $0x1] sm:$0xff]  ;;  %s2268_s24 = sshll.u32 %s134_s23, 6  ;;  %s2588_s8 = scalar_lea.hbm %s4569_s2, 128 }
  0x1b   : > { %472 = vrot.lane.b32.xlu2 %v2714_v0, %s2632_s26  ;;  %468 = vrot.lane.b32.xlu1 %v2717_v1, %s2632_s26  ;;  %v2726_v3 = vld [vmem:[%s2711_s25 + $0x39] sm:$0xff]  ;;  %v2729_v4 = vld [vmem:[%s2711_s25 + $0x21] sm:$0xff] }
  0x1c   : > { %464 = vrot.lane.b32.xlu0 %v174_v2, %s2632_s26  ;;  %v175_v5 = vld [vmem:[%s2711_s25 + $0x9] sm:$0xff]  ;;  %v2738_v6 = vld [vmem:[%s2711_s25 + $0x61] sm:$0xff]  ;;  %v2741_v7 = vld [vmem:[%s2711_s25 + $0x51] sm:$0xff] }
  0x1d   : > { %v2744_v8 = vld [vmem:[%s2711_s25 + $0x49] sm:$0xff]  ;;  %v2753_v9 = vld [vmem:[%s2711_s25 + $0x81] sm:$0xff]  ;;  %v2756_v10 = vld [vmem:[%s2711_s25 + $0x79] sm:$0xff] }
  0x1e   : > { %v2759_v11 = vld [vmem:[%s2711_s25 + $0x69] sm:$0xff]  ;;  %v2771_v13 = vld [vmem:[%s2711_s25 + $0x99] sm:$0xff]  ;;  %v2774_v14 = vld [vmem:[%s2711_s25 + $0x91] sm:$0xff] }
  0x1f   : > { %v2768_v12 = vld [vmem:[%s2711_s25 + $0xa9] sm:$0xff]  ;;  %v2786_v16 = vld [vmem:[%s2711_s25 + $0xc1] sm:$0xff]  ;;  %v2789_v17 = vld [vmem:[%s2711_s25 + $0xb1] sm:$0xff] }
  0x20   : > { %v2783_v15 = vld [vmem:[%s2711_s25 + $0xc9] sm:$0xff]  ;;  %v2798_v18 = vld [vmem:[%s2711_s25 + $0xf1] sm:$0xff]  ;;  %v2801_v19 = vld [vmem:[%s2711_s25 + $0xe1] sm:$0xff] }
  0x21   : > { %v2804_v20 = vld [vmem:[%s2711_s25 + $0xd9] sm:$0xff]  ;;  %v2813_v21 = vld [vmem:[%s2711_s25 + $0x111] sm:$0xff]  ;;  %v2816_v22 = vld [vmem:[%s2711_s25 + $0x109] sm:$0xff] }
  0x22   : > { %v2819_v23 = vld [vmem:[%s2711_s25 + $0xf9] sm:$0xff]  ;;  %v2831_v25 = vld [vmem:[%s2711_s25 + $0x129] sm:$0xff]  ;;  %v2834_v26 = vld [vmem:[%s2711_s25 + $0x121] sm:$0xff] }
  0x23   : > { %474 = vrot.lane.b32.xlu2 %v2726_v3, %s2632_s26  ;;  %470 = vrot.lane.b32.xlu1 %v2729_v4, %s2632_s26  ;;  %v2828_v24 = vld [vmem:[%s2711_s25 + $0x139] sm:$0xff]  ;;  %v2846_v28 = vld [vmem:[%s2711_s25 + $0x151] sm:$0xff] }
  0x24   : > { %466 = vrot.lane.b32.xlu0 %v175_v5, %s2632_s26  ;;  %v2843_v27 = vld [vmem:[%s2711_s25 + $0x159] sm:$0xff]  ;;  %v2849_v29 = vld [vmem:[%s2711_s25 + $0x141] sm:$0xff]  ;;  %v2859_v31 = vld [vmem:[%s2711_s25 + $0x171] sm:$0xff] }
  0x25   : > { %v206_v30 = vld [vmem:[%s2711_s25 + $0x2] sm:$0xff]  ;;  %v2873_v34 = vld [vmem:[%s2711_s25 + $0x1a] sm:$0xff]  ;;  %v207_v35 = vld [vmem:[%s2711_s25 + $0xa] sm:$0xff] }
  0x26   : > { %v2862_v32 = vld [vmem:[%s2711_s25 + $0x169] sm:$0xff]  ;;  %v2887_v38 = vld [vmem:[%s2711_s25 + $0x3a] sm:$0xff]  ;;  %v2890_v39 = vld [vmem:[%s2711_s25 + $0x32] sm:$0xff] }
  0x27   : > { %v2870_v33 = vld [vmem:[%s2711_s25 + $0x22] sm:$0xff]  ;;  %v2884_v37 = vld [vmem:[%s2711_s25 + $0x4a] sm:$0xff]  ;;  %v2907_v43 = vld [vmem:[%s2711_s25 + $0x52] sm:$0xff] }
  0x28   : > { %v2901_v41 = vld [vmem:[%s2711_s25 + $0x6a] sm:$0xff]  ;;  %v2904_v42 = vld [vmem:[%s2711_s25 + $0x62] sm:$0xff]  ;;  %v2918_v45 = vld [vmem:[%s2711_s25 + $0x92] sm:$0xff] }
  0x29   : > { %v2921_v46 = vld [vmem:[%s2711_s25 + $0x82] sm:$0xff]  ;;  %v2924_v47 = vld [vmem:[%s2711_s25 + $0x7a] sm:$0xff]  ;;  %v2939_v51 = vld [vmem:[%s2711_s25 + $0xb2] sm:$0xff] }
  0x2a   : > { %v2942_v52 = vld [vmem:[%s2711_s25 + $0xaa] sm:$0xff]  ;;  %v2945_v53 = vld [vmem:[%s2711_s25 + $0x9a] sm:$0xff]  ;;  %v2966_v59 = vld [vmem:[%s2711_s25 + $0xc2] sm:$0xff] }
  0x2b   : > { %480 = vrot.lane.b32.xlu2 %v2738_v6, %s2632_s26  ;;  %478 = vrot.lane.b32.xlu1 %v2741_v7, %s2632_s26  ;;  %v2960_v57 = vld [vmem:[%s2711_s25 + $0xda] sm:$0xff]  ;;  %v2963_v58 = vld [vmem:[%s2711_s25 + $0xca] sm:$0xff] }
  0x2c   : > { %476 = vrot.lane.b32.xlu0 %v2744_v8, %s2632_s26  ;;  %v2981_v63 = vld [vmem:[%s2711_s25 + $0xfa] sm:$0xff]  ;;  %v2984_v2 = vld [vmem:[%s2711_s25 + $0xf2] sm:$0xff]  ;;  %v2987_v5 = vld [vmem:[%s2711_s25 + $0xe2] sm:$0xff] }
  0x33   : > { %486 = vrot.lane.b32.xlu2 %v2753_v9, %s2632_s26  ;;  %484 = vrot.lane.b32.xlu1 %v2756_v10, %s2632_s26 }
  0x34   : > { %482 = vrot.lane.b32.xlu0 %v2759_v11, %s2632_s26 }
  0x3b   : > { %492 = vrot.lane.b32.xlu2 %v2768_v12, %s2632_s26  ;;  %490 = vrot.lane.b32.xlu1 %v2771_v13, %s2632_s26 }
  0x3c   : > { %488 = vrot.lane.b32.xlu0 %v2774_v14, %s2632_s26 }
  0x43   : > { %498 = vrot.lane.b32.xlu2 %v2783_v15, %s2632_s26  ;;  %496 = vrot.lane.b32.xlu1 %v2786_v16, %s2632_s26 }
  0x44   : > { %494 = vrot.lane.b32.xlu0 %v2789_v17, %s2632_s26 }
  0x4b   : > { %504 = vrot.lane.b32.xlu2 %v2798_v18, %s2632_s26  ;;  %502 = vrot.lane.b32.xlu1 %v2801_v19, %s2632_s26 }
  0x4c   : > { %500 = vrot.lane.b32.xlu0 %v2804_v20, %s2632_s26 }
  0x53   : > { %510 = vrot.lane.b32.xlu2 %v2813_v21, %s2632_s26  ;;  %508 = vrot.lane.b32.xlu1 %v2816_v22, %s2632_s26 }
  0x54   : > { %506 = vrot.lane.b32.xlu0 %v2819_v23, %s2632_s26 }
  0x5b   : > { %516 = vrot.lane.b32.xlu2 %v2828_v24, %s2632_s26  ;;  %514 = vrot.lane.b32.xlu1 %v2831_v25, %s2632_s26 }
  0x5c   : > { %512 = vrot.lane.b32.xlu0 %v2834_v26, %s2632_s26 }
  0x63   : > { %522 = vrot.lane.b32.xlu2 %v2843_v27, %s2632_s26  ;;  %520 = vrot.lane.b32.xlu1 %v2846_v28, %s2632_s26 }
  0x64   : > { %518 = vrot.lane.b32.xlu0 %v2849_v29, %s2632_s26 }
  0x6b   : > { %592 = vrot.lane.b32.xlu2 %v206_v30, %s2633_s27  ;;  %526 = vrot.lane.b32.xlu1 %v2859_v31, %s2632_s26 }
  0x6c   : > { %524 = vrot.lane.b32.xlu0 %v2862_v32, %s2632_s26  ;;  %s2500_s26 = sshll.u32 %s2679_s13, 6 }
  0x73   : > { %598 = vrot.lane.b32.xlu2 %v2870_v33, %s2633_s27  ;;  %596 = vrot.lane.b32.xlu1 %v2873_v34, %s2633_s27 }
  0x74   : > { %594 = vrot.lane.b32.xlu0 %v207_v35, %s2633_s27 }
  0x75   : > { %v2881_v36 = vpop.permute.xlu2 %472 }
  0x76   : > { %4617 = vst [vmem:[#allocation6_spill] sm:$0xff] %v2881_v36  ;;  %v3026_v36 = vld [vmem:[%s2711_s25 + $0x13a] sm:$0xff] }
  0x7b   : > { %604 = vrot.lane.b32.xlu2 %v2884_v37, %s2633_s27  ;;  %602 = vrot.lane.b32.xlu1 %v2887_v38, %s2633_s27 }
  0x7c   : > { %600 = vrot.lane.b32.xlu0 %v2890_v39, %s2633_s27 }
  0x7d   : > { %v2898_v40 = vpop.permute.xlu2 %474 }
  0x7e   : > { %4618 = vst [vmem:[#allocation7_spill] sm:$0xff] %v2898_v40  ;;  %v3008_v40 = vld [vmem:[%s2711_s25 + $0x10a] sm:$0xff] }
  0x83   : > { %610 = vrot.lane.b32.xlu2 %v2901_v41, %s2633_s27  ;;  %608 = vrot.lane.b32.xlu1 %v2904_v42, %s2633_s27 }
  0x84   : > { %606 = vrot.lane.b32.xlu0 %v2907_v43, %s2633_s27 }
  0x85   : > { %v2915_v44 = vpop.permute.xlu2 %480 }
  0x86   : > { %4619 = vst [vmem:[#allocation8_spill] sm:$0xff] %v2915_v44  ;;  %v3002_v44 = vld [vmem:[%s2711_s25 + $0x122] sm:$0xff] }
  0x8b   : > { %616 = vrot.lane.b32.xlu2 %v2918_v45, %s2633_s27  ;;  %614 = vrot.lane.b32.xlu1 %v2921_v46, %s2633_s27 }
  0x8c   : > { %612 = vrot.lane.b32.xlu0 %v2924_v47, %s2633_s27 }
  0x8d   : > { %v2932_v48 = vpop.permute.xlu2 %486  ;;  %v2934_v49 = vpop.permute.xlu1 %468 }
  0x8e   : > { %4620 = vst [vmem:[#allocation9_spill] sm:$0xff] %v2932_v48  ;;  %v2936_v50 = vpop.permute.xlu0 %464  ;;  %v3005_v48 = vld [vmem:[%s2711_s25 + $0x112] sm:$0xff] }
  0x8f   : > { %4621 = vst [vmem:[#allocation10_spill] sm:$0xff] %v2934_v49  ;;  %v3065_v49 = vld [vmem:[%s2711_s25 + $0x172] sm:$0xff] }
  0x90   : > { %4622 = vst [vmem:[#allocation11_spill] sm:$0xff] %v2936_v50 }
  0x91   : > { %4645 = vst [vmem:[#allocation34_spill] sm:$0xff] %v3065_v49 }
  0x93   : > { %622 = vrot.lane.b32.xlu2 %v2939_v51, %s2633_s27  ;;  %620 = vrot.lane.b32.xlu1 %v2942_v52, %s2633_s27 }
  0x94   : > { %618 = vrot.lane.b32.xlu0 %v2945_v53, %s2633_s27 }
  0x95   : > { %v2953_v54 = vpop.permute.xlu2 %492  ;;  %v2955_v55 = vpop.permute.xlu1 %470 }
  0x96   : > { %4623 = vst [vmem:[#allocation12_spill] sm:$0xff] %v2953_v54  ;;  %v2957_v56 = vpop.permute.xlu0 %466  ;;  %v3050_v54 = vld [vmem:[%s2711_s25 + $0x152] sm:$0xff] }
  0x97   : > { %4624 = vst [vmem:[#allocation13_spill] sm:$0xff] %v2955_v55  ;;  %v3068_v55 = vld [vmem:[%s2711_s25 + $0x18] sm:$0xff] }
  0x98   : > { %4625 = vst [vmem:[#allocation14_spill] sm:$0xff] %v2957_v56  ;;  %v3029_v56 = vld [vmem:[%s2711_s25 + $0x12a] sm:$0xff] }
  0x99   : > { %4641 = vst [vmem:[#allocation30_spill] sm:$0xff] %v3050_v54 }
  0x9a   : > { %4646 = vst [vmem:[#allocation35_spill] sm:$0xff] %v3068_v55 }
  0x9b   : > { %628 = vrot.lane.b32.xlu2 %v2960_v57, %s2633_s27  ;;  %626 = vrot.lane.b32.xlu1 %v2963_v58, %s2633_s27 }
  0x9c   : > { %624 = vrot.lane.b32.xlu0 %v2966_v59, %s2633_s27 }
  0x9d   : > { %v2974_v60 = vpop.permute.xlu2 %498  ;;  %v2976_v61 = vpop.permute.xlu1 %478 }
  0x9e   : > { %4626 = vst [vmem:[#allocation15_spill] sm:$0xff] %v2974_v60  ;;  %v2978_v62 = vpop.permute.xlu0 %476  ;;  %v3044_v60 = vld [vmem:[%s2711_s25 + $0x16a] sm:$0xff] }
  0x9f   : > { %4627 = vst [vmem:[#allocation16_spill] sm:$0xff] %v2976_v61  ;;  %v3023_v61 = vld [vmem:[%s2711_s25 + $0x142] sm:$0xff] }
  0xa0   : > { %4628 = vst [vmem:[#allocation17_spill] sm:$0xff] %v2978_v62 }
  0xa1   : > { %4635 = vst [vmem:[#allocation24_spill] sm:$0xff] %v3023_v61 }
  0xa2   : > { %4639 = vst [vmem:[#allocation28_spill] sm:$0xff] %v3044_v60 }
  0xa3   : > { %634 = vrot.lane.b32.xlu2 %v2981_v63, %s2633_s27  ;;  %632 = vrot.lane.b32.xlu1 %v2984_v2, %s2633_s27 }
  0xa4   : > { %630 = vrot.lane.b32.xlu0 %v2987_v5, %s2633_s27 }
  0xa5   : > { %v2995_v30 = vpop.permute.xlu2 %504  ;;  %v2997_v35 = vpop.permute.xlu1 %484 }
  0xa6   : > { %4629 = vst [vmem:[#allocation18_spill] sm:$0xff] %v2995_v30  ;;  %v2999_v50 = vpop.permute.xlu0 %482 }
  0xa7   : > { %4630 = vst [vmem:[#allocation19_spill] sm:$0xff] %v2997_v35 }
  0xa8   : > { %4631 = vst [vmem:[#allocation20_spill] sm:$0xff] %v2999_v50 }
  0xab   : > { %640 = vrot.lane.b32.xlu2 %v3002_v44, %s2633_s27  ;;  %638 = vrot.lane.b32.xlu1 %v3005_v48, %s2633_s27 }
  0xac   : > { %636 = vrot.lane.b32.xlu0 %v3008_v40, %s2633_s27 }
  0xad   : > { %v3016_v62 = vpop.permute.xlu2 %510  ;;  %v3018_v50 = vpop.permute.xlu1 %490 }
  0xae   : > { %4632 = vst [vmem:[#allocation21_spill] sm:$0xff] %v3016_v62  ;;  %v3020_v35 = vpop.permute.xlu0 %488 }
  0xaf   : > { %4633 = vst [vmem:[#allocation22_spill] sm:$0xff] %v3018_v50  ;;  %v3047_v50 = vld [vmem:[%s2711_s25 + $0x15a] sm:$0xff] }
  0xb0   : > { %4634 = vst [vmem:[#allocation23_spill] sm:$0xff] %v3020_v35 }
  0xb1   : > { %4640 = vst [vmem:[#allocation29_spill] sm:$0xff] %v3047_v50 }
  0xb3   : > { %646 = vrot.lane.b32.xlu2 %v3023_v61, %s2633_s27  ;;  %644 = vrot.lane.b32.xlu1 %v3026_v36, %s2633_s27  ;;  %v3086_v61 = vld [vmem:[%s2711_s25 + $0x38] sm:$0xff] }
  0xb4   : > { %642 = vrot.lane.b32.xlu0 %v3029_v56, %s2633_s27  ;;  %4651 = vst [vmem:[#allocation40_spill] sm:$0xff] %v3086_v61 }
  0xb5   : > { %v3037_v62 = vpop.permute.xlu2 %516  ;;  %v3039_v35 = vpop.permute.xlu1 %496 }
  0xb6   : > { %4636 = vst [vmem:[#allocation25_spill] sm:$0xff] %v3037_v62  ;;  %v3041_v30 = vpop.permute.xlu0 %494 }
  0xb7   : > { %4637 = vst [vmem:[#allocation26_spill] sm:$0xff] %v3039_v35 }
  0xb8   : > { %4638 = vst [vmem:[#allocation27_spill] sm:$0xff] %v3041_v30 }
  0xbb   : > { %652 = vrot.lane.b32.xlu2 %v3044_v60, %s2633_s27  ;;  %650 = vrot.lane.b32.xlu1 %v3047_v50, %s2633_s27  ;;  %v3071_v60 = vld [vmem:[%s2711_s25 + $0x20] sm:$0xff]  ;;  %v3092_v50 = vld [vmem:[%s2711_s25 + $0x30] sm:$0xff] }
  0xbc   : > { %648 = vrot.lane.b32.xlu0 %v3050_v54, %s2633_s27  ;;  %4647 = vst [vmem:[#allocation36_spill] sm:$0xff] %v3071_v60  ;;  %v3089_v54 = vld [vmem:[%s2711_s25 + $0x48] sm:$0xff] }
  0xbd   : > { %v3058_v62 = vpop.permute.xlu2 %522  ;;  %v3060_v35 = vpop.permute.xlu1 %502  ;;  %4652 = vst [vmem:[#allocation41_spill] sm:$0xff] %v3089_v54 }
  0xbe   : > { %4642 = vst [vmem:[#allocation31_spill] sm:$0xff] %v3058_v62  ;;  %v3062_v30 = vpop.permute.xlu0 %500 }
  0xbf   : > { %4643 = vst [vmem:[#allocation32_spill] sm:$0xff] %v3060_v35 }
  0xc0   : > { %4644 = vst [vmem:[#allocation33_spill] sm:$0xff] %v3062_v30 }
  0xc1   : > { %4653 = vst [vmem:[#allocation42_spill] sm:$0xff] %v3092_v50 }
  0xc3   : > { %722 = vrot.lane.b32.xlu2 %v3071_v60, %s2634_s28  ;;  %720 = vrot.lane.b32.xlu1 %v3068_v55, %s2634_s28  ;;  %v150_v60 = vld [vmem:[%s2711_s25 + $0x60] sm:$0xff] }
  0xc4   : > { %654 = vrot.lane.b32.xlu0 %v3065_v49, %s2633_s27  ;;  %v3111_v49 = vld [vmem:[%s2711_s25 + $0x50] sm:$0xff] }
  0xc5   : > { %v3079_v62 = vpop.permute.xlu2 %592  ;;  %v3081_v30 = vpop.permute.xlu1 %508  ;;  %4658 = vst [vmem:[#allocation47_spill] sm:$0xff] %v3111_v49 }
  0xc6   : > { %4648 = vst [vmem:[#allocation37_spill] sm:$0xff] %v3079_v62  ;;  %v3083_v35 = vpop.permute.xlu0 %506 }
  0xc7   : > { %4649 = vst [vmem:[#allocation38_spill] sm:$0xff] %v3081_v30  ;;  %v3108_v30 = vld [vmem:[%s2711_s25 + $0x68] sm:$0xff] }
  0xc8   : > { %4650 = vst [vmem:[#allocation39_spill] sm:$0xff] %v3083_v35 }
  0xc9   : > { %4657 = vst [vmem:[#allocation46_spill] sm:$0xff] %v3108_v30 }
  0xcb   : > { %728 = vrot.lane.b32.xlu2 %v3089_v54, %s2634_s28  ;;  %726 = vrot.lane.b32.xlu1 %v3086_v61, %s2634_s28 }
  0xcc   : > { %724 = vrot.lane.b32.xlu0 %v3092_v50, %s2634_s28 }
  0xcd   : > { %v3100_v62 = vpop.permute.xlu2 %598  ;;  %v3102_v35 = vpop.permute.xlu1 %514 }
  0xce   : > { %4654 = vst [vmem:[#allocation43_spill] sm:$0xff] %v3100_v62  ;;  %v3104_v55 = vpop.permute.xlu0 %512  ;;  %v3129_v62 = vld [vmem:[%s2711_s25 + $0x78] sm:$0xff] }
  0xcf   : > { %4655 = vst [vmem:[#allocation44_spill] sm:$0xff] %v3102_v35  ;;  %v3126_v35 = vld [vmem:[%s2711_s25 + $0x90] sm:$0xff] }
  0xd0   : > { %4656 = vst [vmem:[#allocation45_spill] sm:$0xff] %v3104_v55  ;;  %v153_v55 = vld [vmem:[%s2711_s25 + $0x80] sm:$0xff] }
  0xd1   : > { %4662 = vst [vmem:[#allocation51_spill] sm:$0xff] %v3126_v35 }
  0xd2   : > { %4663 = vst [vmem:[#allocation52_spill] sm:$0xff] %v3129_v62 }
  0xd3   : > { %734 = vrot.lane.b32.xlu2 %v3108_v30, %s2634_s28  ;;  %732 = vrot.lane.b32.xlu1 %v150_v60, %s2634_s28  ;;  %v3143_v30 = vld [vmem:[%s2711_s25 + $0xa8] sm:$0xff] }
  0xd4   : > { %730 = vrot.lane.b32.xlu0 %v3111_v49, %s2634_s28  ;;  %4667 = vst [vmem:[#allocation56_spill] sm:$0xff] %v3143_v30  ;;  %v3149_v49 = vld [vmem:[%s2711_s25 + $0x98] sm:$0xff] }
  0xd5   : > { %v3118_v61 = vpop.permute.xlu2 %604  ;;  %v3120_v50 = vpop.permute.xlu1 %520  ;;  %4669 = vst [vmem:[#allocation58_spill] sm:$0xff] %v3149_v49 }
  0xd6   : > { %4659 = vst [vmem:[#allocation48_spill] sm:$0xff] %v3118_v61  ;;  %v3122_v54 = vpop.permute.xlu0 %518 }
  0xd7   : > { %4660 = vst [vmem:[#allocation49_spill] sm:$0xff] %v3120_v50 }
  0xd8   : > { %4661 = vst [vmem:[#allocation50_spill] sm:$0xff] %v3122_v54  ;;  %v3146_v54 = vld [vmem:[%s2711_s25 + $0xb0] sm:$0xff] }
  0xd9   : > { %4668 = vst [vmem:[#allocation57_spill] sm:$0xff] %v3146_v54 }
  0xdb   : > { %740 = vrot.lane.b32.xlu2 %v3126_v35, %s2634_s28  ;;  %738 = vrot.lane.b32.xlu1 %v153_v55, %s2634_s28  ;;  %v3164_v35 = vld [vmem:[%s2711_s25 + $0xc8] sm:$0xff] }
  0xdc   : > { %736 = vrot.lane.b32.xlu0 %v3129_v62, %s2634_s28  ;;  %4673 = vst [vmem:[#allocation62_spill] sm:$0xff] %v3164_v35  ;;  %v3170_v62 = vld [vmem:[%s2711_s25 + $0xc0] sm:$0xff] }
  0xdd   : > { %v3136_v60 = vpop.permute.xlu2 %610  ;;  %v3138_v61 = vpop.permute.xlu1 %526  ;;  %4675 = vst [vmem:[#allocation64_spill] sm:$0xff] %v3170_v62 }
  0xde   : > { %4664 = vst [vmem:[#allocation53_spill] sm:$0xff] %v3136_v60  ;;  %v3140_v50 = vpop.permute.xlu0 %524 }
  0xdf   : > { %4665 = vst [vmem:[#allocation54_spill] sm:$0xff] %v3138_v61  ;;  %v3167_v61 = vld [vmem:[%s2711_s25 + $0xd8] sm:$0xff] }
  0xe0   : > { %4666 = vst [vmem:[#allocation55_spill] sm:$0xff] %v3140_v50 }
  0xe1   : > { %4674 = vst [vmem:[#allocation63_spill] sm:$0xff] %v3167_v61 }
  0xe3   : > { %746 = vrot.lane.b32.xlu2 %v3146_v54, %s2634_s28  ;;  %744 = vrot.lane.b32.xlu1 %v3143_v30, %s2634_s28  ;;  %v3185_v54 = vld [vmem:[%s2711_s25 + $0xf0] sm:$0xff] }
  0xe4   : > { %742 = vrot.lane.b32.xlu0 %v3149_v49, %s2634_s28  ;;  %4679 = vst [vmem:[#allocation68_spill] sm:$0xff] %v3185_v54  ;;  %v3191_v49 = vld [vmem:[%s2711_s25 + $0xe0] sm:$0xff] }
  0xe5   : > { %v3157_v55 = vpop.permute.xlu2 %616  ;;  %v3159_v60 = vpop.permute.xlu1 %596  ;;  %4681 = vst [vmem:[#allocation70_spill] sm:$0xff] %v3191_v49 }
  0xe6   : > { %4670 = vst [vmem:[#allocation59_spill] sm:$0xff] %v3157_v55  ;;  %v3161_v50 = vpop.permute.xlu0 %594 }
  0xe7   : > { %4671 = vst [vmem:[#allocation60_spill] sm:$0xff] %v3159_v60  ;;  %v3188_v60 = vld [vmem:[%s2711_s25 + $0xf8] sm:$0xff] }
  0xe8   : > { %4672 = vst [vmem:[#allocation61_spill] sm:$0xff] %v3161_v50 }
  0xe9   : > { %4680 = vst [vmem:[#allocation69_spill] sm:$0xff] %v3188_v60 }
  0xeb   : > { %752 = vrot.lane.b32.xlu2 %v3167_v61, %s2634_s28  ;;  %750 = vrot.lane.b32.xlu1 %v3164_v35, %s2634_s28  ;;  %v3212_v61 = vld [vmem:[%s2711_s25 + $0x108] sm:$0xff] }
  0xec   : > { %748 = vrot.lane.b32.xlu0 %v3170_v62, %s2634_s28  ;;  %v3209_v62 = vld [vmem:[%s2711_s25 + $0x120] sm:$0xff]  ;;  %4687 = vst [vmem:[#allocation76_spill] sm:$0xff] %v3212_v61 }
  0xed   : > { %v3178_v55 = vpop.permute.xlu2 %622  ;;  %v3180_v50 = vpop.permute.xlu1 %602  ;;  %4686 = vst [vmem:[#allocation75_spill] sm:$0xff] %v3209_v62 }
  0xee   : > { %4676 = vst [vmem:[#allocation65_spill] sm:$0xff] %v3178_v55  ;;  %v3182_v30 = vpop.permute.xlu0 %600  ;;  %v3206_v55 = vld [vmem:[%s2711_s25 + $0x110] sm:$0xff] }
  0xef   : > { %4677 = vst [vmem:[#allocation66_spill] sm:$0xff] %v3180_v50 }
  0xf0   : > { %4678 = vst [vmem:[#allocation67_spill] sm:$0xff] %v3182_v30 }
  0xf1   : > { %4685 = vst [vmem:[#allocation74_spill] sm:$0xff] %v3206_v55 }
  0xf3   : > { %758 = vrot.lane.b32.xlu2 %v3188_v60, %s2634_s28  ;;  %756 = vrot.lane.b32.xlu1 %v3185_v54, %s2634_s28  ;;  %v3227_v60 = vld [vmem:[%s2711_s25 + $0x138] sm:$0xff] }
  0xf4   : > { %754 = vrot.lane.b32.xlu0 %v3191_v49, %s2634_s28  ;;  %4691 = vst [vmem:[#allocation80_spill] sm:$0xff] %v3227_v60  ;;  %v3233_v49 = vld [vmem:[%s2711_s25 + $0x128] sm:$0xff] }
  0xf5   : > { %v3199_v50 = vpop.permute.xlu2 %628  ;;  %v3201_v30 = vpop.permute.xlu1 %608  ;;  %4693 = vst [vmem:[#allocation82_spill] sm:$0xff] %v3233_v49 }
  0xf6   : > { %4682 = vst [vmem:[#allocation71_spill] sm:$0xff] %v3199_v50  ;;  %v3203_v35 = vpop.permute.xlu0 %606  ;;  %v3230_v50 = vld [vmem:[%s2711_s25 + $0x140] sm:$0xff] }
  0xf7   : > { %4683 = vst [vmem:[#allocation72_spill] sm:$0xff] %v3201_v30 }
  0xf8   : > { %4684 = vst [vmem:[#allocation73_spill] sm:$0xff] %v3203_v35 }
  0xf9   : > { %4692 = vst [vmem:[#allocation81_spill] sm:$0xff] %v3230_v50 }
  0xfb   : > { %764 = vrot.lane.b32.xlu2 %v3209_v62, %s2634_s28  ;;  %762 = vrot.lane.b32.xlu1 %v3206_v55, %s2634_s28  ;;  %v3251_v62 = vld [vmem:[%s2711_s25 + $0x168] sm:$0xff] }
  0xfc   : > { %760 = vrot.lane.b32.xlu0 %v3212_v61, %s2634_s28  ;;  %4698 = vst [vmem:[#allocation87_spill] sm:$0xff] %v3251_v62  ;;  %v3254_v61 = vld [vmem:[%s2711_s25 + $0x150] sm:$0xff] }
  0xfd   : > { %v3220_v30 = vpop.permute.xlu2 %634  ;;  %v3222_v35 = vpop.permute.xlu1 %614 }
  0xfe   : > { %4688 = vst [vmem:[#allocation77_spill] sm:$0xff] %v3220_v30  ;;  %v3224_v54 = vpop.permute.xlu0 %612  ;;  %v3248_v30 = vld [vmem:[%s2711_s25 + $0x158] sm:$0xff] }
  0xff   : > { %4689 = vst [vmem:[#allocation78_spill] sm:$0xff] %v3222_v35 }
 0x100   : > { %4690 = vst [vmem:[#allocation79_spill] sm:$0xff] %v3224_v54 }
 0x101   : > { %4697 = vst [vmem:[#allocation86_spill] sm:$0xff] %v3248_v30 }
 0x103   : > { %770 = vrot.lane.b32.xlu2 %v3230_v50, %s2634_s28  ;;  %768 = vrot.lane.b32.xlu1 %v3227_v60, %s2634_s28  ;;  %v2301_v50 = vld [vmem:[%s2711_s25 + $0x188] sm:$0xff] }
 0x104   : > { %766 = vrot.lane.b32.xlu0 %v3233_v49, %s2634_s28  ;;  %v3273_v49 = vld [vmem:[%s2711_s25 + $0x170] sm:$0xff] }
 0x105   : > { %v3241_v35 = vpop.permute.xlu2 %640  ;;  %v3243_v54 = vpop.permute.xlu1 %620 }
 0x106   : > { %4694 = vst [vmem:[#allocation83_spill] sm:$0xff] %v3241_v35  ;;  %v3245_v55 = vpop.permute.xlu0 %618  ;;  %v3270_v35 = vld [vmem:[%s2711_s25 + $0x180] sm:$0xff] }
 0x107   : > { %4695 = vst [vmem:[#allocation84_spill] sm:$0xff] %v3243_v54 }
 0x108   : > { %4696 = vst [vmem:[#allocation85_spill] sm:$0xff] %v3245_v55 }
 0x109   : > { %4701 = vst [vmem:[#allocation90_spill] sm:$0xff] %v3270_v35 }
 0x10b   : > { %776 = vrot.lane.b32.xlu2 %v3251_v62, %s2634_s28  ;;  %774 = vrot.lane.b32.xlu1 %v3248_v30, %s2634_s28 }
 0x10c   : > { %772 = vrot.lane.b32.xlu0 %v3254_v61, %s2634_s28 }
 0x10d   : > { %v3262_v60 = vpop.permute.xlu2 %646  ;;  %v3264_v54 = vpop.permute.xlu1 %626 }
 0x10e   : > { %4699 = vst [vmem:[#allocation88_spill] sm:$0xff] %v3264_v54  ;;  %v3266_v55 = vpop.permute.xlu0 %624 }
 0x10f   : > { %4700 = vst [vmem:[#allocation89_spill] sm:$0xff] %v3266_v55 }
 0x113   : > { %782 = vrot.lane.b32.xlu2 %v2301_v50, %s2634_s28  ;;  %780 = vrot.lane.b32.xlu1 %v3270_v35, %s2634_s28 }
 0x114   : > { %778 = vrot.lane.b32.xlu0 %v3273_v49, %s2634_s28 }
 0x115   : > { %v3280_v30 = vpop.permute.xlu2 %652  ;;  %v3282_v62 = vpop.permute.xlu1 %632 }
 0x116   : > { %v3284_v54 = vpop.permute.xlu0 %630 }
 0x11b   : > { %852 = vrot.lane.b32.xlu2 %v2714_v0, %s2635_s29  ;;  %850 = vrot.lane.b32.xlu1 %v2729_v4, %s2635_s29 }
 0x11c   : > { %848 = vrot.lane.b32.xlu0 %v2717_v1, %s2635_s29 }
 0x11d   : > { %v3292_v50 = vpop.permute.xlu2 %722  ;;  %v3294_v35 = vpop.permute.xlu1 %638 }
 0x11e   : > { %v3296_v55 = vpop.permute.xlu0 %636 }
 0x123   : > { %858 = vrot.lane.b32.xlu2 %v2741_v7, %s2635_s29  ;;  %856 = vrot.lane.b32.xlu1 %v2744_v8, %s2635_s29 }
 0x124   : > { %854 = vrot.lane.b32.xlu0 %v2726_v3, %s2635_s29 }
 0x125   : > { %v3304_v0 = vpop.permute.xlu2 %728  ;;  %v3306_v4 = vpop.permute.xlu1 %644 }
 0x126   : > { %v3308_v1 = vpop.permute.xlu0 %642 }
 0x12b   : > { %864 = vrot.lane.b32.xlu2 %v2756_v10, %s2635_s29  ;;  %862 = vrot.lane.b32.xlu1 %v2759_v11, %s2635_s29 }
 0x12c   : > { %860 = vrot.lane.b32.xlu0 %v2738_v6, %s2635_s29 }
 0x12d   : > { %v3316_v7 = vpop.permute.xlu2 %734  ;;  %v3318_v8 = vpop.permute.xlu1 %650 }
 0x12e   : > { %v3320_v3 = vpop.permute.xlu0 %648 }
 0x133   : > { %870 = vrot.lane.b32.xlu2 %v2771_v13, %s2635_s29  ;;  %868 = vrot.lane.b32.xlu1 %v2774_v14, %s2635_s29 }
 0x134   : > { %866 = vrot.lane.b32.xlu0 %v2753_v9, %s2635_s29 }
 0x135   : > { %v3328_v10 = vpop.permute.xlu2 %740  ;;  %v3330_v11 = vpop.permute.xlu1 %720 }
 0x136   : > { %4702 = vst [vmem:[#allocation91_spill] sm:$0xff] %v3328_v10  ;;  %v3332_v6 = vpop.permute.xlu0 %654  ;;  %v4739_v10 = vld [vmem:[#allocation82_spill] sm:$0xff] }
 0x137   : > { %4703 = vst [vmem:[#allocation92_spill] sm:$0xff] %v3330_v11  ;;  %v3410_v11 = vld [vmem:[%s2711_s25 + $0x181] sm:$0xff] }
 0x138   : > { %4711 = vst [vmem:[#allocation100_spill] sm:$0xff] %v3410_v11 }
 0x13b   : > { %876 = vrot.lane.b32.xlu2 %v2786_v16, %s2635_s29  ;;  %874 = vrot.lane.b32.xlu1 %v2789_v17, %s2635_s29 }
 0x13c   : > { %872 = vrot.lane.b32.xlu0 %v2768_v12, %s2635_s29 }
 0x13d   : > { %v3340_v13 = vpop.permute.xlu2 %746  ;;  %v3342_v14 = vpop.permute.xlu1 %726 }
 0x13e   : > { %v3344_v9 = vpop.permute.xlu0 %724 }
 0x143   : > { %882 = vrot.lane.b32.xlu2 %v2801_v19, %s2635_s29  ;;  %880 = vrot.lane.b32.xlu1 %v2804_v20, %s2635_s29 }
 0x144   : > { %878 = vrot.lane.b32.xlu0 %v2783_v15, %s2635_s29 }
 0x145   : > { %v3352_v16 = vpop.permute.xlu2 %752  ;;  %v3354_v17 = vpop.permute.xlu1 %732 }
 0x146   : > { %4704 = vst [vmem:[#allocation93_spill] sm:$0xff] %v3354_v17  ;;  %v3356_v12 = vpop.permute.xlu0 %730 }
 0x147   : > { %4705 = vst [vmem:[#allocation94_spill] sm:$0xff] %v3356_v12 }
 0x14b   : > { %888 = vrot.lane.b32.xlu2 %v2816_v22, %s2635_s29  ;;  %886 = vrot.lane.b32.xlu1 %v2819_v23, %s2635_s29 }
 0x14c   : > { %884 = vrot.lane.b32.xlu0 %v2798_v18, %s2635_s29 }
 0x14d   : > { %v3364_v19 = vpop.permute.xlu2 %758  ;;  %v3366_v20 = vpop.permute.xlu1 %738 }
 0x14e   : > { %4706 = vst [vmem:[#allocation95_spill] sm:$0xff] %v3366_v20  ;;  %v3368_v15 = vpop.permute.xlu0 %736  ;;  %v3407_v20 = vld [vmem:[%s2711_s25 + $0x189] sm:$0xff] }
 0x14f   : > { %4707 = vst [vmem:[#allocation96_spill] sm:$0xff] %v3368_v15 }
 0x150   : > { %4710 = vst [vmem:[#allocation99_spill] sm:$0xff] %v3407_v20 }
 0x153   : > { %894 = vrot.lane.b32.xlu2 %v2831_v25, %s2635_s29  ;;  %892 = vrot.lane.b32.xlu1 %v2834_v26, %s2635_s29 }
 0x154   : > { %890 = vrot.lane.b32.xlu0 %v2813_v21, %s2635_s29 }
 0x155   : > { %v3376_v22 = vpop.permute.xlu2 %764  ;;  %v3378_v18 = vpop.permute.xlu1 %744 }
 0x156   : > { %4708 = vst [vmem:[#allocation97_spill] sm:$0xff] %v3378_v18  ;;  %v3380_v23 = vpop.permute.xlu0 %742  ;;  %v4728_v18 = vld [vmem:[#allocation63_spill] sm:$0xff] }
 0x157   : > { %4709 = vst [vmem:[#allocation98_spill] sm:$0xff] %v3380_v23 }
 0x15b   : > { %900 = vrot.lane.b32.xlu2 %v2846_v28, %s2635_s29  ;;  %898 = vrot.lane.b32.xlu1 %v2849_v29, %s2635_s29 }
 0x15c   : > { %896 = vrot.lane.b32.xlu0 %v2828_v24, %s2635_s29 }
 0x15d   : > { %v3388_v25 = vpop.permute.xlu2 %770  ;;  %v3390_v21 = vpop.permute.xlu1 %750 }
 0x15e   : > { %v3392_v26 = vpop.permute.xlu0 %748 }
 0x163   : > { %906 = vrot.lane.b32.xlu2 %v2859_v31, %s2635_s29  ;;  %904 = vrot.lane.b32.xlu1 %v2862_v32, %s2635_s29 }
 0x164   : > { %902 = vrot.lane.b32.xlu0 %v2843_v27, %s2635_s29 }
 0x165   : > { %v3400_v28 = vpop.permute.xlu2 %776  ;;  %v3402_v29 = vpop.permute.xlu1 %756 }
 0x166   : > { %v3404_v24 = vpop.permute.xlu0 %754 }
 0x16b   : > { %976 = vrot.lane.b32.xlu2 %v2873_v34, %s2636_s30  ;;  %910 = vrot.lane.b32.xlu1 %v3407_v20, %s2635_s29 }
 0x16c   : > { %908 = vrot.lane.b32.xlu0 %v3410_v11, %s2635_s29  ;;  %v3533_v11 = vld [vmem:[%s2711_s25 + $0x182] sm:$0xff]  ;;  %s2198_s29 = scalar_lea.hbm %s4569_s2, %s2500_s26 }
 0x16d   : > { %v3418_v27 = vpop.permute.xlu2 %782  ;;  %v3420_v31 = vpop.permute.xlu1 %762 }
 0x16e   : > { %v3422_v32 = vpop.permute.xlu0 %760 }
 0x173   : > { %982 = vrot.lane.b32.xlu2 %v2887_v38, %s2636_s30  ;;  %980 = vrot.lane.b32.xlu1 %v2890_v39, %s2636_s30 }
 0x174   : > { %978 = vrot.lane.b32.xlu0 %v2870_v33, %s2636_s30 }
 0x175   : > { %v3430_v34 = vpop.permute.xlu2 %852  ;;  %v3432_v20 = vpop.permute.xlu1 %768 }
 0x176   : > { %v3434_v15 = vpop.permute.xlu0 %766 }
 0x17b   : > { %988 = vrot.lane.b32.xlu2 %v2904_v42, %s2636_s30  ;;  %986 = vrot.lane.b32.xlu1 %v2907_v43, %s2636_s30 }
 0x17c   : > { %984 = vrot.lane.b32.xlu0 %v2884_v37, %s2636_s30 }
 0x17d   : > { %v3442_v38 = vpop.permute.xlu2 %858  ;;  %v3444_v39 = vpop.permute.xlu1 %774 }
 0x17e   : > { %4712 = vst [vmem:[#allocation101_spill] sm:$0xff] %v3442_v38  ;;  %v3446_v33 = vpop.permute.xlu0 %772 }
 0x183   : > { %994 = vrot.lane.b32.xlu2 %v2921_v46, %s2636_s30  ;;  %992 = vrot.lane.b32.xlu1 %v2924_v47, %s2636_s30 }
 0x184   : > { %990 = vrot.lane.b32.xlu0 %v2901_v41, %s2636_s30 }
 0x185   : > { %v3454_v42 = vpop.permute.xlu2 %864  ;;  %v3456_v43 = vpop.permute.xlu1 %780 }
 0x186   : > { %4713 = vst [vmem:[#allocation102_spill] sm:$0xff] %v3454_v42  ;;  %v3458_v37 = vpop.permute.xlu0 %778 }
 0x18b   : > { %1000 = vrot.lane.b32.xlu2 %v2942_v52, %s2636_s30  ;;  %998 = vrot.lane.b32.xlu1 %v2945_v53, %s2636_s30 }
 0x18c   : > { %996 = vrot.lane.b32.xlu0 %v2918_v45, %s2636_s30 }
 0x18d   : > { %v3466_v46 = vpop.permute.xlu2 %870  ;;  %v3468_v47 = vpop.permute.xlu1 %850 }
 0x18e   : > { %4714 = vst [vmem:[#allocation103_spill] sm:$0xff] %v3466_v46  ;;  %v3470_v41 = vpop.permute.xlu0 %848  ;;  %v4724_v46 = vld [vmem:[#allocation32_spill] sm:$0xff] }
 0x18f   : > { %4715 = vst [vmem:[#allocation104_spill] sm:$0xff] %v3470_v41  ;;  %v4720_v41 = vld [vmem:[#allocation29_spill] sm:$0xff] }
 0x190   : > { %4723 = vst [vmem:[#allocation29_spill] sm:$0xff] %v3533_v11 }
 0x193   : > { %1006 = vrot.lane.b32.xlu2 %v2963_v58, %s2636_s30  ;;  %1004 = vrot.lane.b32.xlu1 %v2966_v59, %s2636_s30 }
 0x194   : > { %1002 = vrot.lane.b32.xlu0 %v2939_v51, %s2636_s30 }
 0x195   : > { %v3478_v52 = vpop.permute.xlu2 %876  ;;  %v3480_v53 = vpop.permute.xlu1 %856 }
 0x196   : > { %v3482_v45 = vpop.permute.xlu0 %854 }
 0x19b   : > { %1012 = vrot.lane.b32.xlu2 %v2984_v2, %s2636_s30  ;;  %1010 = vrot.lane.b32.xlu1 %v2987_v5, %s2636_s30 }
 0x19c   : > { %1008 = vrot.lane.b32.xlu0 %v2960_v57, %s2636_s30 }
 0x19d   : > { %v3490_v58 = vpop.permute.xlu2 %882  ;;  %v3492_v59 = vpop.permute.xlu1 %862 }
 0x19e   : > { %v3494_v51 = vpop.permute.xlu0 %860 }
 0x19f   : > { %4716 = vst [vmem:[#allocation105_spill] sm:$0xff] %v3494_v51 }
 0x1a3   : > { %1018 = vrot.lane.b32.xlu2 %v3005_v48, %s2636_s30  ;;  %1016 = vrot.lane.b32.xlu1 %v3008_v40, %s2636_s30 }
 0x1a4   : > { %1014 = vrot.lane.b32.xlu0 %v2981_v63, %s2636_s30 }
 0x1a5   : > { %v3502_v2 = vpop.permute.xlu2 %888  ;;  %v3504_v5 = vpop.permute.xlu1 %868 }
 0x1a6   : > { %4717 = vst [vmem:[#allocation106_spill] sm:$0xff] %v3504_v5  ;;  %v3506_v57 = vpop.permute.xlu0 %866 }
 0x1a7   : > { %4718 = vst [vmem:[#allocation107_spill] sm:$0xff] %v3506_v57  ;;  %v4721_v57 = vld [vmem:[#allocation30_spill] sm:$0xff] }
 0x1ab   : > { %1024 = vrot.lane.b32.xlu2 %v3026_v36, %s2636_s30  ;;  %1022 = vrot.lane.b32.xlu1 %v3029_v56, %s2636_s30  ;;  %v4722_v36 = vld [vmem:[#allocation24_spill] sm:$0xff] }
 0x1ac   : > { %1020 = vrot.lane.b32.xlu0 %v3002_v44, %s2636_s30 }
 0x1ad   : > { %v3514_v40 = vpop.permute.xlu2 %894  ;;  %v3516_v48 = vpop.permute.xlu1 %874 }
 0x1ae   : > { %v3518_v63 = vpop.permute.xlu0 %872 }
 0x1af   : > { %4719 = vst [vmem:[#allocation108_spill] sm:$0xff] %v3518_v63  ;;  %v4725_v63 = vld [vmem:[#allocation70_spill] sm:$0xff] }
 0x1b0   : > { %v1476_v23 = vsel %vm1456_vm0, %v4725_v63, %v4724_v46  ;;  %v4729_v46 = vld [vmem:[#allocation28_spill] sm:$0xff]  ;;  %v4730_v63 = vld [vmem:[#allocation71_spill] sm:$0xff] }
 0x1b1   : > { %v1509_v51 = vsel %vm1489_vm1, %v1476_v23, %v3284_v54 }
 0x1b3   : > { %1030 = vrot.lane.b32.xlu2 %v4720_v41, %s2636_s30  ;;  %1028 = vrot.lane.b32.xlu1 %v4721_v57, %s2636_s30  ;;  %v4726_v41 = vld [vmem:[#allocation34_spill] sm:$0xff] }
 0x1b4   : > { %1026 = vrot.lane.b32.xlu0 %v4722_v36, %s2636_s30  ;;  %v4727_v36 = vld [vmem:[#allocation33_spill] sm:$0xff] }
 0x1b5   : > { %v3526_v42 = vpop.permute.xlu2 %900  ;;  %v3528_v56 = vpop.permute.xlu1 %880  ;;  %v1475_v38 = vsel %vm1456_vm0, %v4728_v18, %v4727_v36 }
 0x1b6   : > { %v3530_v44 = vpop.permute.xlu0 %878  ;;  %v1508_v12 = vsel %vm1489_vm1, %v1475_v38, %v4730_v63  ;;  %v2366_v38 = vld [vmem:[%s2711_s25 + $0x30] sm:$0xff] }
 0x1b7   : > { %v1541_v18 = vsel %vm1522_vm2, %v1508_v12, %v3402_v29  ;;  %v3566_v63 = vld [vmem:[%s2711_s25 + $0x18a] sm:$0xff] }
 0x1b8   : > { %4731 = vst [vmem:[#allocation30_spill] sm:$0xff] %v3566_v63 }
 0x1bb   : > { %1036 = vrot.lane.b32.xlu2 %v3533_v11, %s2636_s30  ;;  %1034 = vrot.lane.b32.xlu1 %v4726_v41, %s2636_s30  ;;  %v1542_v11 = vsel %vm1522_vm2, %v1509_v51, %v3364_v19  ;;  %v4732_v19 = vld [vmem:[#allocation38_spill] sm:$0xff]  ;;  %v4733_v51 = vld [vmem:[#allocation76_spill] sm:$0xff] }
 0x1bc   : > { %1032 = vrot.lane.b32.xlu0 %v4729_v46, %s2636_s30  ;;  %v2367_v46 = vld [vmem:[%s2711_s25 + $0x38] sm:$0xff]  ;;  %v1479_v5 = vsel %vm1456_vm0, %v4733_v51, %v4732_v19  ;;  %v4735_v19 = vld [vmem:[#allocation13_spill] sm:$0xff] }
 0x1bd   : > { %v3553_v41 = vpop.permute.xlu2 %906  ;;  %v887_v17 = vpop.permute.xlu1 %886 }
 0x1be   : > { %v3558_v36 = vsel %vm1555_vm3, %v1542_v11, %v887_v17  ;;  %v885_v54 = vpop.permute.xlu0 %884  ;;  %v1512_v11 = vsel %vm1489_vm1, %v1479_v5, %v3296_v55  ;;  %v4737_v55 = vld [vmem:[#allocation43_spill] sm:$0xff] }
 0x1bf   : > { %v3561_v23 = vsel %vm1555_vm3, %v1541_v18, %v885_v54  ;;  %v1545_v17 = vsel %vm1522_vm2, %v1512_v11, %v3376_v22  ;;  %v4740_v11 = vld [vmem:[#allocation47_spill] sm:$0xff] }
 0x1c3   : > { %1106 = vrot.lane.b32.xlu2 %v2367_v46, %s2637_s3  ;;  %1104 = vrot.lane.b32.xlu1 %v2366_v38, %s2637_s3  ;;  %v2370_v46 = vld [vmem:[%s2711_s25 + $0x60] sm:$0xff] }
 0x1c4   : > { %1038 = vrot.lane.b32.xlu0 %v3566_v63, %s2636_s30  ;;  %v4736_v38 = vld [vmem:[#allocation36_spill] sm:$0xff]  ;;  %s2201_s30 = sshll.u32 %s2198_s29, 4  ;;  %s2202_s30 = int_to_ptr.hbm [resolvable:$true] %s2201_s30 }
 0x1c5   : > { %v3579_v12 = vpop.permute.xlu2 %976  ;;  %v893_v29 = vpop.permute.xlu1 %892  ;;  %v1460_v51 = vsel %vm1456_vm0, %v4736_v38, %v4735_v19  ;;  %v4738_v63 = vld [vmem:[#allocation44_spill] sm:$0xff] }
 0x1c6   : > { %4734 = vst [vmem:[#allocation24_spill] sm:$0xff] %v3579_v12  ;;  %v3582_v18 = vsel %vm1555_vm3, %v1545_v17, %v893_v29  ;;  %v3584_v54 = vpop.permute.xlu0 %890  ;;  %v1493_v5 = vsel %vm1489_vm1, %v1460_v51, %v4737_v55  ;;  %v1482_v22 = vsel %vm1456_vm0, %v4739_v10, %v4738_v63  ;;  %v4741_v17 = vld [vmem:[#allocation45_spill] sm:$0xff]  ;;  %v4742_v29 = vld [vmem:[#allocation75_spill] sm:$0xff] }
 0x1c7   : > { %v1481_v12 = vsel %vm1456_vm0, %v4742_v29, %v4741_v17  ;;  %v1515_v19 = vsel %vm1489_vm1, %v1482_v22, %v3308_v1  ;;  %v1526_v38 = vsel %vm1522_vm2, %v1493_v5, %v3342_v14  ;;  %v4743_v51 = vld [vmem:[#allocation41_spill] sm:$0xff]  ;;  %v4744_v10 = vld [vmem:[#allocation83_spill] sm:$0xff] }
 0x1c8   : > { %v1514_v63 = vsel %vm1489_vm1, %v1481_v12, %v4744_v10  ;;  %v1559_v55 = vsel %vm1555_vm3, %v1526_v38, %v3482_v45  ;;  %v4745_v45 = vld [vmem:[#allocation52_spill] sm:$0xff]  ;;  %v4747_v38 = vld [vmem:[#allocation81_spill] sm:$0xff]  ;;  %v4748_v10 = vld [vmem:[#allocation46_spill] sm:$0xff] }
 0x1c9   : > { %v1547_v1 = vsel %vm1522_vm2, %v1514_v63, %v3432_v20 }
 0x1cb   : > { %1112 = vrot.lane.b32.xlu2 %v2370_v46, %s2637_s3  ;;  %1110 = vrot.lane.b32.xlu1 %v4740_v11, %s2637_s3  ;;  %v1548_v46 = vsel %vm1522_vm2, %v1515_v19, %v3388_v25  ;;  %v2373_v25 = vld [vmem:[%s2711_s25 + $0x80] sm:$0xff]  ;;  %v4746_v19 = vld [vmem:[#allocation50_spill] sm:$0xff] }
 0x1cc   : > { %1108 = vrot.lane.b32.xlu0 %v4743_v51, %s2637_s3  ;;  %v1484_v20 = vsel %vm1456_vm0, %v4747_v38, %v4746_v19 }
 0x1cd   : > { %v983_v17 = vpop.permute.xlu2 %982  ;;  %v899_v29 = vpop.permute.xlu1 %898  ;;  %v1517_v63 = vsel %vm1489_vm1, %v1484_v20, %v3262_v60  ;;  %v4751_v60 = vld [vmem:[#allocation58_spill] sm:$0xff]  ;;  %v4752_v20 = vld [vmem:[#allocation51_spill] sm:$0xff] }
 0x1ce   : > { %v3616_v14 = vsel %vm1588_vm4, %v1559_v55, %v983_v17  ;;  %v3619_v5 = vsel %vm1555_vm3, %v1548_v46, %v899_v29  ;;  %v897_v12 = vpop.permute.xlu0 %896  ;;  %v1550_v17 = vsel %vm1522_vm2, %v1517_v63, %v3444_v39 }
 0x1cf   : > { %v3622_v22 = vsel %vm1555_vm3, %v1547_v1, %v897_v12  ;;  %v2376_v12 = vld [vmem:[%s2711_s25 + $0xa8] sm:$0xff] }
 0x1d3   : > { %1118 = vrot.lane.b32.xlu2 %v2373_v25, %s2637_s3  ;;  %1116 = vrot.lane.b32.xlu1 %v4745_v45, %s2637_s3  ;;  %v4750_v25 = vld [vmem:[#allocation54_spill] sm:$0xff] }
 0x1d4   : > { %1114 = vrot.lane.b32.xlu0 %v4748_v10, %s2637_s3  ;;  %v1488_v19 = vsel %vm1456_vm0, %v3273_v49, %v4750_v25  ;;  %v4755_v25 = vld [vmem:[#allocation35_spill] sm:$0xff] }
 0x1d5   : > { %v3635_v46 = vpop.permute.xlu2 %988  ;;  %v3637_v55 = vpop.permute.xlu1 %904  ;;  %v1521_v38 = vsel %vm1489_vm1, %v1488_v19, %v3332_v6  ;;  %v4756_v19 = vld [vmem:[#allocation60_spill] sm:$0xff] }
 0x1d6   : > { %4749 = vst [vmem:[#allocation32_spill] sm:$0xff] %v3635_v46  ;;  %v903_v29 = vpop.permute.xlu0 %902  ;;  %v1554_v39 = vsel %vm1522_vm2, %v1521_v38, %v3418_v27  ;;  %v4757_v27 = vld [vmem:[#allocation64_spill] sm:$0xff]  ;;  %v4760_v46 = vld [vmem:[#allocation27_spill] sm:$0xff] }
 0x1d7   : > { %v3642_v1 = vsel %vm1555_vm3, %v1550_v17, %v903_v29  ;;  %v2379_v29 = vld [vmem:[%s2711_s25 + $0xc8] sm:$0xff] }
 0x1db   : > { %1124 = vrot.lane.b32.xlu2 %v2376_v12, %s2637_s3  ;;  %1122 = vrot.lane.b32.xlu1 %v4751_v60, %s2637_s3  ;;  %v4754_v12 = vld [vmem:[#allocation10_spill] sm:$0xff] }
 0x1dc   : > { %1120 = vrot.lane.b32.xlu0 %v4752_v20, %s2637_s3  ;;  %v1459_v6 = vsel %vm1456_vm0, %v4755_v25, %v4754_v12 }
 0x1dd   : > { %v3657_v10 = vpop.permute.xlu2 %994  ;;  %v911_v63 = vpop.permute.xlu1 %910  ;;  %v1492_v20 = vsel %vm1489_vm1, %v1459_v6, %v4756_v19  ;;  %v2414_v6 = vld [vmem:[%s2711_s25 + $0xf1] sm:$0xff] }
 0x1de   : > { %4753 = vst [vmem:[#allocation70_spill] sm:$0xff] %v3657_v10  ;;  %v3660_v49 = vsel %vm1555_vm3, %v1554_v39, %v911_v63  ;;  %v3662_v17 = vpop.permute.xlu0 %908  ;;  %v1525_v38 = vsel %vm1522_vm2, %v1492_v20, %v3344_v9  ;;  %v4758_v39 = vld [vmem:[#allocation57_spill] sm:$0xff]  ;;  %v2382_v19 = vld [vmem:[%s2711_s25 + $0xf0] sm:$0xff] }
 0x1df   : > { %v1558_v63 = vsel %vm1555_vm3, %v1525_v38, %v3430_v34  ;;  %v1472_v9 = vsel %vm1456_vm0, %v4758_v39, %v4760_v46  ;;  %v4761_v20 = vld [vmem:[#allocation65_spill] sm:$0xff] }
 0x1e0   : > { %v1505_v51 = vsel %vm1489_vm1, %v1472_v9, %v4761_v20  ;;  %v2422_v9 = vld [vmem:[%s2711_s25 + $0x151] sm:$0xff] }
 0x1e1   : > { %v1538_v34 = vsel %vm1522_vm2, %v1505_v51, %v3390_v21  ;;  %v2406_v20 = vld [vmem:[%s2711_s25 + $0x91] sm:$0xff] }
 0x1e2   : > { %v1571_v38 = vsel %vm1555_vm3, %v1538_v34, %v3530_v44  ;;  %v2398_v34 = vld [vmem:[%s2711_s25 + $0x31] sm:$0xff] }
 0x1e3   : > { %1130 = vrot.lane.b32.xlu2 %v2379_v29, %s2637_s3  ;;  %1128 = vrot.lane.b32.xlu1 %v4757_v27, %s2637_s3 }
 0x1e4   : > { %1126 = vrot.lane.b32.xlu0 %v4758_v39, %s2637_s3 }
 0x1e5   : > { %v3679_v10 = vpop.permute.xlu2 %1000  ;;  %v981_v12 = vpop.permute.xlu1 %980 }
 0x1e6   : > { %4759 = vst [vmem:[#allocation34_spill] sm:$0xff] %v3679_v10  ;;  %v3682_v25 = vsel %vm1588_vm4, %v1558_v63, %v981_v12  ;;  %v3684_v29 = vpop.permute.xlu0 %978  ;;  %v4769_v10 = vld [vmem:[#allocation56_spill] sm:$0xff] }
 0x1eb   : > { %1152 = vrot.lane.b32.xlu2 %v3254_v61, %s2637_s3  ;;  %1264 = vrot.lane.b32.xlu1 %v2414_v6, %s2638_s4  ;;  %v2446_v6 = vld [vmem:[%s2711_s25 + $0xf2] sm:$0xff] }
 0x1ec   : > { %1136 = vrot.lane.b32.xlu0 %v2382_v19, %s2637_s3 }
 0x1ed   : > { %v1007_v46 = vpop.permute.xlu2 %1006  ;;  %v3701_v39 = vpop.permute.xlu1 %986 }
 0x1ee   : > { %v3704_v63 = vsel %vm1588_vm4, %v1571_v38, %v1007_v46  ;;  %v3706_v12 = vpop.permute.xlu0 %984  ;;  %v4765_v38 = vld [vmem:[#allocation39_spill] sm:$0xff] }
 0x1ef   : > { %4762 = vst [vmem:[#allocation33_spill] sm:$0xff] %v3704_v63 }
 0x1f3   : > { %1408 = vrot.lane.b32.xlu2 %v4721_v57, %s2639_s5  ;;  %1280 = vrot.lane.b32.xlu1 %v2422_v9, %s2638_s4  ;;  %v4766_v57 = vld [vmem:[#allocation69_spill] sm:$0xff] }
 0x1f4   : > { %1392 = vrot.lane.b32.xlu0 %v2446_v6, %s2639_s5  ;;  %v1478_v46 = vsel %vm1456_vm0, %v4766_v57, %v4765_v38  ;;  %v4767_v9 = vld [vmem:[#allocation77_spill] sm:$0xff] }
 0x1f5   : > { %v1013_v21 = vpop.permute.xlu2 %1012  ;;  %v3714_v44 = vpop.permute.xlu1 %992  ;;  %v1511_v6 = vsel %vm1489_vm1, %v1478_v46, %v4767_v9  ;;  %v2415_v9 = vld [vmem:[%s2711_s25 + $0xf9] sm:$0xff] }
 0x1f6   : > { %4763 = vst [vmem:[#allocation63_spill] sm:$0xff] %v3714_v44  ;;  %v3718_v51 = vsel %vm1588_vm4, %v3561_v23, %v1013_v21  ;;  %v3720_v19 = vpop.permute.xlu0 %990  ;;  %v1544_v23 = vsel %vm1522_vm2, %v1511_v6, %v3420_v31  ;;  %v2430_v44 = vld [vmem:[%s2711_s25 + $0x32] sm:$0xff] }
 0x1f7   : > { %4764 = vst [vmem:[#allocation28_spill] sm:$0xff] %v3718_v51  ;;  %v1577_v21 = vsel %vm1555_vm3, %v1544_v23, %v3584_v54  ;;  %v4770_v6 = vld [vmem:[#allocation22_spill] sm:$0xff]  ;;  %v4771_v54 = vld [vmem:[#allocation84_spill] sm:$0xff] }
 0x1fb   : > { %1138 = vrot.lane.b32.xlu2 %v4766_v57, %s2637_s3  ;;  %1248 = vrot.lane.b32.xlu1 %v2406_v20, %s2638_s4  ;;  %v2438_v57 = vld [vmem:[%s2711_s25 + $0x92] sm:$0xff]  ;;  %v4768_v20 = vld [vmem:[#allocation12_spill] sm:$0xff] }
 0x1fc   : > { %1232 = vrot.lane.b32.xlu0 %v2398_v34, %s2638_s4  ;;  %v1471_v31 = vsel %vm1456_vm0, %v4769_v10, %v4768_v20  ;;  %v1470_v34 = vsel %vm1456_vm0, %v4751_v60, %v4770_v6 }
 0x1fd   : > { %v1019_v63 = vpop.permute.xlu2 %1018  ;;  %v3737_v51 = vpop.permute.xlu1 %998  ;;  %v1504_v23 = vsel %vm1489_vm1, %v1471_v31, %v4771_v54  ;;  %v2447_v54 = vld [vmem:[%s2711_s25 + $0xfa] sm:$0xff] }
 0x1fe   : > { %v3740_v38 = vsel %vm1588_vm4, %v1577_v21, %v1019_v63  ;;  %v3742_v46 = vpop.permute.xlu0 %996  ;;  %v4772_v63 = vld [vmem:[#allocation85_spill] sm:$0xff]  ;;  %v1537_v10 = vsel %vm1522_vm2, %v1504_v23, %v3392_v26  ;;  %v2391_v23 = vld [vmem:[%s2711_s25 + $0x158] sm:$0xff] }
 0x1ff   : > { %v1503_v21 = vsel %vm1489_vm1, %v1470_v34, %v4772_v63  ;;  %v1570_v20 = vsel %vm1555_vm3, %v1537_v10, %v3478_v52  ;;  %v4773_v52 = vld [vmem:[#allocation15_spill] sm:$0xff]  ;;  %v4774_v63 = vld [vmem:[#allocation62_spill] sm:$0xff] }
 0x200   : > { %v1536_v60 = vsel %vm1522_vm2, %v1503_v21, %v3340_v13  ;;  %v2423_v13 = vld [vmem:[%s2711_s25 + $0x159] sm:$0xff]  ;;  %v1474_v21 = vsel %vm1456_vm0, %v4774_v63, %v4773_v52  ;;  %v4775_v10 = vld [vmem:[#allocation26_spill] sm:$0xff] }
 0x203   : > { %1266 = vrot.lane.b32.xlu2 %v2415_v9, %s2638_s4  ;;  %1376 = vrot.lane.b32.xlu1 %v2438_v57, %s2639_s5  ;;  %v1569_v9 = vsel %vm1555_vm3, %v1536_v60, %v3516_v48  ;;  %v1473_v48 = vsel %vm1456_vm0, %v4757_v27, %v4775_v10  ;;  %v4778_v10 = vld [vmem:[#allocation18_spill] sm:$0xff] }
 0x204   : > { %1360 = vrot.lane.b32.xlu0 %v2430_v44, %s2639_s5 }
 0x205   : > { %v1025_v31 = vpop.permute.xlu2 %1024  ;;  %v1005_v6 = vpop.permute.xlu1 %1004 }
 0x206   : > { %v3770_v57 = vsel %vm1588_vm4, %v3622_v22, %v1025_v31  ;;  %v3773_v34 = vsel %vm1588_vm4, %v1570_v20, %v1005_v6  ;;  %v1003_v26 = vpop.permute.xlu0 %1002  ;;  %v4776_v22 = vld [vmem:[#allocation88_spill] sm:$0xff]  ;;  %v4777_v20 = vld [vmem:[#allocation89_spill] sm:$0xff] }
 0x207   : > { %v3776_v44 = vsel %vm1588_vm4, %v1569_v9, %v1003_v26  ;;  %v1507_v60 = vsel %vm1489_vm1, %v1474_v21, %v4776_v22  ;;  %v1506_v31 = vsel %vm1489_vm1, %v1473_v48, %v4777_v20  ;;  %v2399_v21 = vld [vmem:[%s2711_s25 + $0x39] sm:$0xff] }
 0x208   : > { %v1540_v6 = vsel %vm1522_vm2, %v1507_v60, %v3404_v24  ;;  %v1539_v27 = vsel %vm1522_vm2, %v1506_v31, %v3352_v16  ;;  %v2407_v16 = vld [vmem:[%s2711_s25 + $0x99] sm:$0xff] }
 0x209   : > { %v1573_v9 = vsel %vm1555_vm3, %v1540_v6, %v3490_v58  ;;  %v2455_v58 = vld [vmem:[%s2711_s25 + $0x15a] sm:$0xff] }
 0x20a   : > { %v4779_v48 = vld [vmem:[#allocation68_spill] sm:$0xff]  ;;  %v4781_v60 = vld [vmem:[#allocation87_spill] sm:$0xff] }
 0x20b   : > { %1282 = vrot.lane.b32.xlu2 %v2423_v13, %s2638_s4  ;;  %1394 = vrot.lane.b32.xlu1 %v2447_v54, %s2639_s5  ;;  %v1572_v13 = vsel %vm1555_vm3, %v1539_v27, %v3528_v56  ;;  %v1477_v22 = vsel %vm1456_vm0, %v4779_v48, %v4778_v10  ;;  %v4780_v56 = vld [vmem:[#allocation55_spill] sm:$0xff]  ;;  %v4783_v10 = vld [vmem:[#allocation21_spill] sm:$0xff]  ;;  %v4784_v48 = vld [vmem:[#allocation74_spill] sm:$0xff] }
 0x20c   : > { %1154 = vrot.lane.b32.xlu0 %v2391_v23, %s2637_s3  ;;  %v1510_v31 = vsel %vm1489_vm1, %v1477_v22, %v3282_v62  ;;  %v1480_v22 = vsel %vm1456_vm0, %v4784_v48, %v4783_v10 }
 0x20d   : > { %v1031_v26 = vpop.permute.xlu2 %1030  ;;  %v1011_v52 = vpop.permute.xlu1 %1010  ;;  %v1543_v6 = vsel %vm1522_vm2, %v1510_v31, %v3422_v32 }
 0x20e   : > { %v3804_v54 = vsel %vm1588_vm4, %v3642_v1, %v1031_v26  ;;  %v3807_v63 = vsel %vm1588_vm4, %v1573_v9, %v1011_v52  ;;  %v1009_v24 = vpop.permute.xlu0 %1008  ;;  %v1487_v1 = vsel %vm1456_vm0, %v4781_v60, %v4780_v56  ;;  %v143_v52 = vld [vmem:[%s2711_s25 + $0x8] sm:$0xff] }
 0x20f   : > { %v3810_v23 = vsel %vm1588_vm4, %v1572_v13, %v1009_v24  ;;  %v1520_v20 = vsel %vm1489_vm1, %v1487_v1, %v3280_v30  ;;  %v1576_v30 = vsel %vm1555_vm3, %v1543_v6, %v3502_v2  ;;  %v4782_v2 = vld [vmem:[#allocation14_spill] sm:$0xff]  ;;  %v4785_v56 = vld [vmem:[#allocation61_spill] sm:$0xff] }
 0x210   : > { %v1553_v27 = vsel %vm1522_vm2, %v1520_v20, %v3456_v43 }
 0x211   : > { %v1586_v62 = vsel %vm1555_vm3, %v1553_v27, %v3662_v17  ;;  %v2384_v17 = vld [vmem:[%s2711_s25 + $0x108] sm:$0xff] }
 0x213   : > { %1250 = vrot.lane.b32.xlu2 %v2407_v16, %s2638_s4  ;;  %1234 = vrot.lane.b32.xlu1 %v2399_v21, %s2638_s4  ;;  %v2439_v16 = vld [vmem:[%s2711_s25 + $0x9a] sm:$0xff] }
 0x214   : > { %1410 = vrot.lane.b32.xlu0 %v2455_v58, %s2639_s5  ;;  %v2431_v21 = vld [vmem:[%s2711_s25 + $0x3a] sm:$0xff]  ;;  %v1458_v58 = vsel %vm1456_vm0, %v143_v52, %v4782_v2  ;;  %v4786_v52 = vld [vmem:[#allocation6_spill] sm:$0xff] }
 0x215   : > { %v1037_v9 = vpop.permute.xlu2 %1036  ;;  %v1017_v26 = vpop.permute.xlu1 %1016  ;;  %v1491_v1 = vsel %vm1489_vm1, %v1458_v58, %v4785_v56  ;;  %v4790_v58 = vld [vmem:[#allocation67_spill] sm:$0xff] }
 0x216   : > { %v3838_v13 = vsel %vm1588_vm4, %v1586_v62, %v1037_v9  ;;  %v3841_v24 = vsel %vm1588_vm4, %v1576_v30, %v1017_v26  ;;  %v1015_v32 = vpop.permute.xlu0 %1014  ;;  %v1524_v20 = vsel %vm1522_vm2, %v1491_v1, %v3292_v50  ;;  %v2448_v26 = vld [vmem:[%s2711_s25 + $0x10a] sm:$0xff] }
 0x217   : > { %v3845_v43 = vsel %vm1588_vm4, %v3558_v36, %v1015_v32  ;;  %v1513_v36 = vsel %vm1489_vm1, %v1480_v22, %v3294_v35  ;;  %v1557_v6 = vsel %vm1555_vm3, %v1524_v20, %v3468_v47  ;;  %v4787_v32 = vld [vmem:[#allocation42_spill] sm:$0xff] }
 0x218   : > { %v1546_v31 = vsel %vm1522_vm2, %v1513_v36, %v3434_v15  ;;  %v1590_v35 = vsel %vm1588_vm4, %v1557_v6, %v3684_v29  ;;  %v4788_v29 = vld [vmem:[#allocation25_spill] sm:$0xff]  ;;  %v4791_v6 = vld [vmem:[#allocation16_spill] sm:$0xff] }
 0x219   : > { %v1579_v50 = vsel %vm1555_vm3, %v1546_v31, %v3514_v40  ;;  %v1461_v40 = vsel %vm1456_vm0, %v4787_v32, %v4786_v52  ;;  %v2400_v36 = vld [vmem:[%s2711_s25 + $0x49] sm:$0xff] }
 0x21a   : > { %v2456_v31 = vld [vmem:[%s2711_s25 + $0x16a] sm:$0xff] }
 0x21b   : > { %1378 = vrot.lane.b32.xlu2 %v2439_v16, %s2639_s5  ;;  %1362 = vrot.lane.b32.xlu1 %v2431_v21, %s2639_s5  ;;  %v2416_v16 = vld [vmem:[%s2711_s25 + $0x109] sm:$0xff]  ;;  %v4789_v21 = vld [vmem:[#allocation80_spill] sm:$0xff] }
 0x21c   : > { %1140 = vrot.lane.b32.xlu0 %v2384_v17, %s2637_s3  ;;  %v1483_v2 = vsel %vm1456_vm0, %v4789_v21, %v4788_v29  ;;  %v1494_v17 = vsel %vm1489_vm1, %v1461_v40, %v4790_v58  ;;  %v2432_v58 = vld [vmem:[%s2711_s25 + $0x4a] sm:$0xff] }
 0x21d   : > { %v1107_v27 = vpop.permute.xlu2 %1106  ;;  %v1023_v30 = vpop.permute.xlu1 %1022  ;;  %v1527_v10 = vsel %vm1522_vm2, %v1494_v17, %v3304_v0  ;;  %v4796_v17 = vld [vmem:[#allocation19_spill] sm:$0xff] }
 0x21e   : > { %v3873_v62 = vsel %vm1621_vm5, %v1590_v35, %v1107_v27  ;;  %v3876_v9 = vsel %vm1588_vm4, %v1579_v50, %v1023_v30  ;;  %v1021_v15 = vpop.permute.xlu0 %1020  ;;  %v1560_v22 = vsel %vm1555_vm3, %v1527_v10, %v3480_v53  ;;  %v4792_v50 = vld [vmem:[#allocation31_spill] sm:$0xff]  ;;  %v4793_v35 = vld [vmem:[#allocation86_spill] sm:$0xff]  ;;  %v4794_v30 = vld [vmem:[#allocation73_spill] sm:$0xff] }
 0x21f   : > { %v3880_v47 = vsel %vm1588_vm4, %v3582_v18, %v1021_v15  ;;  %v1516_v18 = vsel %vm1489_vm1, %v1483_v2, %v3306_v4  ;;  %v1593_v4 = vsel %vm1588_vm4, %v1560_v22, %v3706_v12  ;;  %v2424_v12 = vld [vmem:[%s2711_s25 + $0x169] sm:$0xff]  ;;  %v1486_v27 = vsel %vm1456_vm0, %v4793_v35, %v4792_v50  ;;  %v4797_v10 = vld [vmem:[#allocation79_spill] sm:$0xff] }
 0x220   : > { %v1549_v48 = vsel %vm1522_vm2, %v1516_v18, %v3446_v33  ;;  %v1519_v32 = vsel %vm1489_vm1, %v1486_v27, %v3318_v8 }
 0x221   : > { %v1582_v0 = vsel %vm1555_vm3, %v1549_v48, %v3526_v42  ;;  %v1464_v42 = vsel %vm1456_vm0, %v4740_v11, %v4791_v6  ;;  %v1552_v40 = vsel %vm1522_vm2, %v1519_v32, %v3458_v37  ;;  %v4798_v48 = vld [vmem:[#allocation91_spill] sm:$0xff]  ;;  %v2393_v6 = vld [vmem:[%s2711_s25 + $0x170] sm:$0xff] }
 0x222   : > { %v1497_v15 = vsel %vm1489_vm1, %v1464_v42, %v4794_v30  ;;  %v1585_v8 = vsel %vm1555_vm3, %v1552_v40, %v3553_v41  ;;  %v2385_v41 = vld [vmem:[%s2711_s25 + $0x110] sm:$0xff]  ;;  %v4803_v40 = vld [vmem:[#allocation40_spill] sm:$0xff] }
 0x223   : > { %1396 = vrot.lane.b32.xlu2 %v2448_v26, %s2639_s5  ;;  %1156 = vrot.lane.b32.xlu1 %v4781_v60, %s2637_s3  ;;  %v4795_v26 = vld [vmem:[#allocation49_spill] sm:$0xff]  ;;  %v2417_v42 = vld [vmem:[%s2711_s25 + $0x111] sm:$0xff] }
 0x224   : > { %1268 = vrot.lane.b32.xlu0 %v2416_v16, %s2638_s4  ;;  %v1485_v52 = vsel %vm1456_vm0, %v3254_v61, %v4795_v26  ;;  %v1722_v26 = vld [vmem:[%s4568_s1 + $0x10] sm:$0xff] }
 0x225   : > { %v1113_v56 = vpop.permute.xlu2 %1112  ;;  %v1029_v1 = vpop.permute.xlu1 %1028  ;;  %v1518_v11 = vsel %vm1489_vm1, %v1485_v52, %v3320_v3  ;;  %v2425_v52 = vld [vmem:[%s2711_s25 + $0x171] sm:$0xff] }
 0x226   : > { %v3909_v20 = vsel %vm1621_vm5, %v1593_v4, %v1113_v56  ;;  %v3912_v60 = vsel %vm1588_vm4, %v1582_v0, %v1029_v1  ;;  %v1027_v33 = vpop.permute.xlu0 %1026  ;;  %v4799_v0 = vld [vmem:[#allocation106_spill] sm:$0xff] }
 0x227   : > { %v3916_v53 = vsel %vm1588_vm4, %v3619_v5, %v1027_v33  ;;  %v1530_v5 = vsel %vm1522_vm2, %v1497_v15, %v3316_v7  ;;  %v1551_v7 = vsel %vm1522_vm2, %v1518_v11, %v3400_v28  ;;  %v1723_v15 = vld [vmem:[%s4568_s1 + $0x18] sm:$0x7] }
 0x228   : > { %v1563_v61 = vsel %vm1555_vm3, %v1530_v5, %v3492_v59  ;;  %v1584_v37 = vsel %vm1555_vm3, %v1551_v7, %v3637_v55  ;;  %v2408_v55 = vld [vmem:[%s2711_s25 + $0xa9] sm:$0xff]  ;;  %2502 = vmatpush.msk.msra.mxu2 %vm1821_vm6, %v1723_v15  ;;  %2503 = vmatpush.msk.msra.mxu3 %vm1821_vm6, %v1723_v15  ;;  %v2449_v11 = vld [vmem:[%s2711_s25 + $0x112] sm:$0xff]  ;;  %v4804_v7 = vld [vmem:[#allocation48_spill] sm:$0xff] }
 0x229   : > { %v1596_v16 = vsel %vm1588_vm4, %v1563_v61, %v3720_v19  ;;  %v1467_v19 = vsel %vm1456_vm0, %v4745_v45, %v4796_v17  ;;  %v4801_v5 = vld [vmem:[#allocation41_spill] sm:$0xff]  ;;  %2462 = vmatpush.msk.msra.mxu0 %vm1821_vm6, %v1723_v15  ;;  %2501 = vmatpush.msk.msra.mxu1 %vm1821_vm6, %v1723_v15 }
 0x22a   : > { %v1500_v18 = vsel %vm1489_vm1, %v1467_v19, %v4797_v10  ;;  %2505 = vmatpush.msra.mxu2 %v1722_v26  ;;  %2506 = vmatpush.msra.mxu3 %v1722_v26  ;;  %v1721_v19 = vld [vmem:[%s4568_s1 + $0x8] sm:$0xff] }
 0x22b   : > { %1236 = vrot.lane.b32.xlu2 %v2400_v36, %s2638_s4  ;;  %1412 = vrot.lane.b32.xlu1 %v2456_v31, %s2639_s5  ;;  %v1533_v22 = vsel %vm1522_vm2, %v1500_v18, %v4798_v48  ;;  %v4810_v18 = vld [vmem:[#allocation32_spill] sm:$0xff] }
 0x22c   : > { %1284 = vrot.lane.b32.xlu0 %v2424_v12, %s2638_s4  ;;  %v1566_v4 = vsel %vm1555_vm3, %v1533_v22, %v4799_v0  ;;  %v2440_v12 = vld [vmem:[%s2711_s25 + $0xaa] sm:$0xff]  ;;  %1838 = vmatpush.msra.mxu0 %v1722_v26  ;;  %v2418_v15 = vld [vmem:[%s2711_s25 + $0x121] sm:$0xff] }
 0x22d   : > { %v1119_v29 = vpop.permute.xlu2 %1118  ;;  %v1035_v3 = vpop.permute.xlu1 %1034  ;;  %v1599_v45 = vsel %vm1588_vm4, %v1566_v4, %v3742_v46  ;;  %2508 = vmatpush.msra.mxu2 %v1721_v19  ;;  %2509 = vmatpush.msra.mxu3 %v1721_v19 }
 0x22e   : > { %v3954_v21 = vsel %vm1621_vm5, %v1596_v16, %v1119_v29  ;;  %v3957_v59 = vsel %vm1588_vm4, %v1585_v8, %v1035_v3  ;;  %v1033_v2 = vpop.permute.xlu0 %1032  ;;  %v4805_v16 = vld [vmem:[#allocation66_spill] sm:$0xff]  ;;  %v4806_v3 = vld [vmem:[#allocation93_spill] sm:$0xff]  ;;  %2504 = vmatpush.msra.mxu1 %v1722_v26  ;;  %1839 = vmatpush.msra.mxu0 %v1721_v19 }
 0x22f   : > { %v3960_v28 = vsel %vm1588_vm4, %v1584_v37, %v1033_v2  ;;  %v4807_v2 = vld [vmem:[#allocation94_spill] sm:$0xff] }
 0x230   : > { %2507 = vmatpush.msra.mxu1 %v1721_v19  ;;  %v2441_v26 = vld [vmem:[%s2711_s25 + $0xb2] sm:$0xff] }
 0x231   : > { %v4819_v19 = vld [vmem:[#allocation34_spill] sm:$0xff] }
 0x233   : > { %1364 = vrot.lane.b32.xlu2 %v2432_v58, %s2639_s5  ;;  %1142 = vrot.lane.b32.xlu1 %v2385_v41, %s2637_s3  ;;  %v4808_v41 = vld [vmem:[#allocation105_spill] sm:$0xff] }
 0x234   : > { %1252 = vrot.lane.b32.xlu0 %v2408_v55, %s2638_s4  ;;  %v4809_v55 = vld [vmem:[#allocation101_spill] sm:$0xff] }
 0x235   : > { %v1125_v56 = vpop.permute.xlu2 %1124  ;;  %v3979_v1 = vpop.permute.xlu1 %1104 }
 0x236   : > { %v3982_v33 = vsel %vm1621_vm5, %v1599_v45, %v1125_v56  ;;  %v1039_v36 = vpop.permute.xlu0 %1038 }
 0x237   : > { %v3986_v31 = vsel %vm1588_vm4, %v3660_v49, %v1039_v36  ;;  %v1720_v36 = vld [vmem:[%s4568_s1] sm:$0xff] }
 0x238   : > { %2511 = vmatpush.msra.mxu2 %v1720_v36  ;;  %2512 = vmatpush.msra.mxu3 %v1720_v36 }
 0x239   : > { %1840 = vmatpush.msra.mxu0 %v1720_v36  ;;  %2510 = vmatpush.msra.mxu1 %v1720_v36  ;;  %v2450_v36 = vld [vmem:[%s2711_s25 + $0x122] sm:$0xff] }
 0x23b   : > { %1158 = vrot.lane.b32.xlu2 %v2393_v6, %s2637_s3  ;;  %1270 = vrot.lane.b32.xlu1 %v2417_v42, %s2638_s4  ;;  %v2386_v42 = vld [vmem:[%s2711_s25 + $0x120] sm:$0xff] }
 0x23c   : > { %1380 = vrot.lane.b32.xlu0 %v2440_v12, %s2639_s5  ;;  %v2401_v12 = vld [vmem:[%s2711_s25 + $0x51] sm:$0xff] }
 0x23d   : > { %v1131_v46 = vpop.permute.xlu2 %1130  ;;  %v1111_v50 = vpop.permute.xlu1 %1110 }
 0x23e   : > { %v3996_v35 = vsel %vm1621_vm5, %v3776_v44, %v1131_v46  ;;  %v4000_v49 = vsel %vm1621_vm5, %v3616_v14, %v1111_v50  ;;  %v1109_v27 = vpop.permute.xlu0 %1108  ;;  %v2457_v44 = vld [vmem:[%s2711_s25 + $0x172] sm:$0xff]  ;;  %v4800_v14 = vld [vmem:[#allocation17_spill] sm:$0xff] }
 0x23f   : > { %v4004_v30 = vsel %vm1621_vm5, %v3682_v25, %v1109_v27  ;;  %v1463_v32 = vsel %vm1456_vm0, %v4801_v5, %v4800_v14  ;;  %v4802_v25 = vld [vmem:[#allocation7_spill] sm:$0xff] }
 0x240   : > { %v1462_v61 = vsel %vm1456_vm0, %v4803_v40, %v4802_v25  ;;  %v1496_v8 = vsel %vm1489_vm1, %v1463_v32, %v4804_v7  ;;  %v2433_v5 = vld [vmem:[%s2711_s25 + $0x52] sm:$0xff]  ;;  %v2565_v32 = vld [vmem:[%s2711_s25 + $0x80] sm:$0xff] }
 0x241   : > { %v1495_v29 = vsel %vm1489_vm1, %v1462_v61, %v4805_v16  ;;  %v1529_v37 = vsel %vm1522_vm2, %v1496_v8, %v4806_v3  ;;  %v4813_v40 = vld [vmem:[#allocation59_spill] sm:$0xff]  ;;  %v4814_v7 = vld [vmem:[#allocation78_spill] sm:$0xff]  ;;  %v4815_v16 = vld [vmem:[#allocation97_spill] sm:$0xff] }
 0x242   : > { %v1528_v58 = vsel %vm1522_vm2, %v1495_v29, %v4807_v2  ;;  %v1562_v17 = vsel %vm1555_vm3, %v1529_v37, %v4808_v41  ;;  %v4816_v3 = vld [vmem:[#allocation98_spill] sm:$0xff]  ;;  %v4817_v2 = vld [vmem:[#allocation108_spill] sm:$0xff]  ;;  %v4818_v41 = vld [vmem:[#allocation103_spill] sm:$0xff] }
 0x243   : > { %1414 = vrot.lane.b32.xlu2 %v2457_v44, %s2639_s5  ;;  %1286 = vrot.lane.b32.xlu1 %v2425_v52, %s2638_s4  ;;  %v1561_v10 = vsel %vm1555_vm3, %v1528_v58, %v4809_v55  ;;  %v1595_v48 = vsel %vm1588_vm4, %v1562_v17, %v4810_v18  ;;  %v2564_v44 = vld [vmem:[%s2711_s25 + $0x90] sm:$0xff]  ;;  %v4811_v52 = vld [vmem:[#allocation23_spill] sm:$0xff] }
 0x244   : > { %1398 = vrot.lane.b32.xlu0 %v2449_v11, %s2639_s5  ;;  %v1594_v4 = vsel %vm1588_vm4, %v1561_v10, %v3701_v39  ;;  %v2409_v39 = vld [vmem:[%s2711_s25 + $0xb1] sm:$0xff]  ;;  %v1469_v14 = vsel %vm1456_vm0, %v2564_v44, %v4811_v52  ;;  %v4812_v11 = vld [vmem:[#allocation9_spill] sm:$0xff] }
 0x245   : > { %v4041_v22 = vpop.permute.xlu2 %1152  ;;  %v1117_v0 = vpop.permute.xlu1 %1116  ;;  %v1468_v25 = vsel %vm1456_vm0, %v2565_v32, %v4812_v11  ;;  %v1502_v61 = vsel %vm1489_vm1, %v1469_v14, %v4813_v40  ;;  %v2402_v44 = vld [vmem:[%s2711_s25 + $0x61] sm:$0xff] }
 0x246   : > { %v4046_v45 = vsel %vm1621_vm5, %v1595_v48, %v1117_v0  ;;  %v1115_v56 = vpop.permute.xlu0 %1114  ;;  %v1501_v8 = vsel %vm1489_vm1, %v1468_v25, %v4814_v7  ;;  %v1535_v29 = vsel %vm1522_vm2, %v1502_v61, %v4815_v16  ;;  %v4822_v14 = vld [vmem:[#allocation29_spill] sm:$0xff]  ;;  %v142_v16 = vld [vmem:[%s2711_s25] sm:$0xff] }
 0x247   : > { %v4052_v6 = vsel %vm1621_vm5, %v1594_v4, %v1115_v56  ;;  %v1534_v37 = vsel %vm1522_vm2, %v1501_v8, %v4816_v3  ;;  %v1568_v58 = vsel %vm1555_vm3, %v1535_v29, %v4817_v2  ;;  %v2387_v8 = vld [vmem:[%s2711_s25 + $0x128] sm:$0xff]  ;;  %v4823_v2 = vld [vmem:[#allocation8_spill] sm:$0xff] }
 0x248   : > { %v1567_v17 = vsel %vm1555_vm3, %v1534_v37, %v4818_v41  ;;  %v1601_v55 = vsel %vm1588_vm4, %v1568_v58, %v4819_v19  ;;  %v2566_v37 = vld [vmem:[%s2711_s25 + $0x60] sm:$0xff]  ;;  %v4824_v41 = vld [vmem:[#allocation11_spill] sm:$0xff] }
 0x249   : > { %v1600_v48 = vsel %vm1588_vm4, %v1567_v17, %v3737_v51  ;;  %v1465_v58 = vsel %vm1456_vm0, %v2566_v37, %v4823_v2  ;;  %v1457_v17 = vsel %vm1456_vm0, %v142_v16, %v4824_v41  ;;  %v4825_v19 = vld [vmem:[#allocation72_spill] sm:$0xff] }
 0x24a   : > { %v4833_v41 = vld [vmem:[#allocation20_spill] sm:$0xff] }
 0x24b   : > { %1144 = vrot.lane.b32.xlu2 %v2386_v42, %s2637_s3  ;;  %1254 = vrot.lane.b32.xlu1 %v2409_v39, %s2638_s4  ;;  %v4820_v42 = vld [vmem:[#allocation100_spill] sm:$0xff]  ;;  %v4821_v39 = vld [vmem:[#allocation90_spill] sm:$0xff] }
 0x24c   : > { %1238 = vrot.lane.b32.xlu0 %v2401_v12, %s2638_s4 }
 0x24d   : > { %v1409_v46 = vpop.permute.xlu2 %1408  ;;  %v4060_v50 = vpop.permute.xlu1 %1122 }
 0x24e   : > { %v4062_v27 = vpop.permute.xlu0 %1120 }
 0x253   : > { %1272 = vrot.lane.b32.xlu2 %v2418_v15, %s2638_s4  ;;  %1382 = vrot.lane.b32.xlu1 %v2441_v26, %s2639_s5  ;;  %v2410_v26 = vld [vmem:[%s2711_s25 + $0xc1] sm:$0xff] }
 0x254   : > { %1366 = vrot.lane.b32.xlu0 %v2433_v5, %s2639_s5  ;;  %v1646_v5 = vsel %vm1621_vm5, %v3770_v57, %v4041_v22  ;;  %v2442_v57 = vld [vmem:[%s2711_s25 + $0xc2] sm:$0xff] }
 0x255   : > { %v4090_v10 = vpop.permute.xlu2 %1138  ;;  %v1129_v18 = vpop.permute.xlu1 %1128  ;;  %v2434_v22 = vld [vmem:[%s2711_s25 + $0x62] sm:$0xff] }
 0x256   : > { %v4095_v0 = vsel %vm1621_vm5, %v1601_v55, %v1129_v18  ;;  %v1127_v4 = vpop.permute.xlu0 %1126  ;;  %v1498_v55 = vsel %vm1489_vm1, %v1465_v58, %v4825_v19  ;;  %v2451_v18 = vld [vmem:[%s2711_s25 + $0x12a] sm:$0xff] }
 0x257   : > { %v4098_v56 = vsel %vm1621_vm5, %v1600_v48, %v1127_v4  ;;  %v2395_v48 = vld [vmem:[%s2711_s25 + $0x188] sm:$0xff] }
 0x258   : > { %v4826_v4 = vld [vmem:[#allocation37_spill] sm:$0xff] }
 0x259   : > { %v2567_v58 = vld [vmem:[%s2711_s25 + $0x68] sm:$0xff] }
 0x25a   : > { %v4834_v19 = vld [vmem:[#allocation53_spill] sm:$0xff] }
 0x25b   : > { %1288 = vrot.lane.b32.xlu2 %v4820_v42, %s2638_s4  ;;  %1400 = vrot.lane.b32.xlu1 %v2450_v36, %s2639_s5  ;;  %v1490_v36 = vsel %vm1489_vm1, %v1457_v17, %v4826_v4  ;;  %v4827_v42 = vld [vmem:[#allocation96_spill] sm:$0xff]  ;;  %v1466_v17 = vsel %vm1456_vm0, %v2567_v58, %v4833_v41  ;;  %v4837_v4 = vld [vmem:[#allocation70_spill] sm:$0xff] }
 0x25c   : > { %1160 = vrot.lane.b32.xlu0 %v4821_v39, %s2637_s3  ;;  %v1531_v39 = vsel %vm1522_vm2, %v1498_v55, %v4827_v42  ;;  %v4835_v55 = vld [vmem:[#allocation95_spill] sm:$0xff]  ;;  %v4838_v42 = vld [vmem:[#allocation30_spill] sm:$0xff] }
 0x25d   : > { %v4106_v12 = vpop.permute.xlu2 %1266  ;;  %v1265_v15 = vpop.permute.xlu1 %1264  ;;  %v2460_v58 = vld [vmem:[%s2711_s25 + $0x19a] sm:$0xff] }
 0x25e   : > { %v1137_v51 = vpop.permute.xlu0 %1136  ;;  %v2428_v41 = vld [vmem:[%s2711_s25 + $0x199] sm:$0xff] }
 0x25f   : > { %v1638_v52 = vsel %vm1621_vm5, %v3810_v23, %v1137_v51  ;;  %v4828_v51 = vld [vmem:[#allocation92_spill] sm:$0xff] }
 0x260   : > { %v1671_v40 = vsel %vm1654_vm7, %v1638_v52, %v1265_v15  ;;  %v2419_v15 = vld [vmem:[%s2711_s25 + $0x129] sm:$0xff] }
 0x263   : > { %1256 = vrot.lane.b32.xlu2 %v2410_v26, %s2638_s4  ;;  %1240 = vrot.lane.b32.xlu1 %v2402_v44, %s2638_s4  ;;  %v1523_v26 = vsel %vm1522_vm2, %v1490_v36, %v4828_v51  ;;  %v4829_v44 = vld [vmem:[#allocation102_spill] sm:$0xff]  ;;  %v4839_v51 = vld [vmem:[#allocation99_spill] sm:$0xff] }
 0x264   : > { %1416 = vrot.lane.b32.xlu0 %v4822_v14, %s2639_s5  ;;  %v1564_v52 = vsel %vm1555_vm3, %v1531_v39, %v4829_v44  ;;  %v4830_v14 = vld [vmem:[#allocation104_spill] sm:$0xff] }
 0x265   : > { %v4119_v32 = vpop.permute.xlu2 %1282  ;;  %v1281_v11 = vpop.permute.xlu1 %1280 }
 0x266   : > { %v1679_v23 = vsel %vm1654_vm7, %v1646_v5, %v1281_v11  ;;  %v1393_v25 = vpop.permute.xlu0 %1392  ;;  %v1556_v5 = vsel %vm1555_vm3, %v1523_v26, %v4830_v14  ;;  %v4831_v11 = vld [vmem:[#allocation63_spill] sm:$0xff] }
 0x267   : > { %v1704_v61 = vsel %vm1687_vm8, %v1671_v40, %v1393_v25  ;;  %v1712_v7 = vsel %vm1687_vm8, %v1679_v23, %v1409_v46  ;;  %v1597_v23 = vsel %vm1588_vm4, %v1564_v52, %v4831_v11  ;;  %v4832_v25 = vld [vmem:[#allocation24_spill] sm:$0xff] }
 0x268   : > { %2479 = vmatmul.msk.f32.vlgmr.msra.gmra.mxu2 %vm1724_vm9, %v1704_v61  ;;  %2487 = vmatmul.msk.f32.vlgmr.msra.gmra.mxu3 %vm1724_vm9, %v1712_v7  ;;  %v1589_v40 = vsel %vm1588_vm4, %v1556_v5, %v4832_v25  ;;  %v1630_v61 = vsel %vm1621_vm5, %v1597_v23, %v4062_v27 }
 0x269   : > { %v1622_v7 = vsel %vm1621_vm5, %v1589_v40, %v3979_v1  ;;  %v1499_v1 = vsel %vm1489_vm1, %v1466_v17, %v4834_v19  ;;  %v2452_v17 = vld [vmem:[%s2711_s25 + $0x13a] sm:$0xff] }
 0x26b   : > { %1384 = vrot.lane.b32.xlu2 %v2442_v57, %s2639_s5  ;;  %1368 = vrot.lane.b32.xlu1 %v2434_v22, %s2639_s5 }
 0x26c   : > { %1146 = vrot.lane.b32.xlu0 %v2387_v8, %s2637_s3 }
 0x26d   : > { %v1251_v29 = vpop.permute.xlu2 %1250  ;;  %v1249_v3 = vpop.permute.xlu1 %1248 }
 0x26e   : > { %v1233_v46 = vpop.permute.xlu0 %1232  ;;  %v1663_v57 = vsel %vm1654_vm7, %v1630_v61, %v1249_v3  ;;  %v2403_v3 = vld [vmem:[%s2711_s25 + $0x69] sm:$0xff] }
 0x26f   : > { %v1655_v16 = vsel %vm1654_vm7, %v1622_v7, %v1233_v46  ;;  %v1532_v46 = vsel %vm1522_vm2, %v1499_v1, %v4835_v55  ;;  %v4840_v1 = vld [vmem:[#allocation28_spill] sm:$0xff] }
 0x273   : > { %1402 = vrot.lane.b32.xlu2 %v2451_v18, %s2639_s5  ;;  %1162 = vrot.lane.b32.xlu1 %v2395_v48, %s2637_s3  ;;  %v4836_v18 = vld [vmem:[#allocation107_spill] sm:$0xff] }
 0x274   : > { %1274 = vrot.lane.b32.xlu0 %v2419_v15, %s2638_s4  ;;  %v1565_v48 = vsel %vm1555_vm3, %v1532_v46, %v4836_v18  ;;  %v1639_v15 = vsel %vm1621_vm5, %v3807_v63, %v4090_v10  ;;  %v2435_v63 = vld [vmem:[%s2711_s25 + $0x6a] sm:$0xff] }
 0x275   : > { %v1379_v22 = vpop.permute.xlu2 %1378  ;;  %v1377_v8 = vpop.permute.xlu1 %1376  ;;  %v1598_v36 = vsel %vm1588_vm4, %v1565_v48, %v4837_v4  ;;  %v1672_v26 = vsel %vm1654_vm7, %v1639_v15, %v4106_v12  ;;  %v2411_v10 = vld [vmem:[%s2711_s25 + $0xc9] sm:$0xff]  ;;  %v2412_v4 = vld [vmem:[%s2711_s25 + $0xd9] sm:$0xff] }
 0x276   : > { %v1361_v37 = vpop.permute.xlu0 %1360  ;;  %v1696_v2 = vsel %vm1687_vm8, %v1663_v57, %v1377_v8  ;;  %v1631_v39 = vsel %vm1621_vm5, %v1598_v36, %v4060_v50  ;;  %v2388_v50 = vld [vmem:[%s2711_s25 + $0x138] sm:$0xff] }
 0x277   : > { %v1688_v27 = vsel %vm1687_vm8, %v1655_v16, %v1361_v37  ;;  %2471 = vmatmul.msk.f32.vlgmr.msra.gmra.mxu1 %vm1724_vm9, %v1696_v2  ;;  %v1664_v44 = vsel %vm1654_vm7, %v1631_v39, %v1251_v29  ;;  %v2420_v57 = vld [vmem:[%s2711_s25 + $0x139] sm:$0xff] }
 0x278   : > { %2463 = vmatmul.msk.f32.vlgmr.msra.gmra.mxu0 %vm1724_vm9, %v1688_v27  ;;  %v1697_v11 = vsel %vm1687_vm8, %v1664_v44, %v1379_v22  ;;  %v2443_v22 = vld [vmem:[%s2711_s25 + $0xca] sm:$0xff]  ;;  %v2404_v36 = vld [vmem:[%s2711_s25 + $0x79] sm:$0xff] }
 0x27b   : > { %1242 = vrot.lane.b32.xlu2 %v2403_v3, %s2638_s4  ;;  %1418 = vrot.lane.b32.xlu1 %v4838_v42, %s2639_s5 }
 0x27c   : > { %1290 = vrot.lane.b32.xlu0 %v4839_v51, %s2638_s4 }
 0x27d   : > { %v1397_v52 = vpop.permute.xlu2 %1396  ;;  %v1395_v14 = vpop.permute.xlu1 %1394 }
 0x27e   : > { %v1155_v5 = vpop.permute.xlu0 %1154  ;;  %v1705_v23 = vsel %vm1687_vm8, %v1672_v26, %v1395_v14  ;;  %v2436_v14 = vld [vmem:[%s2711_s25 + $0x7a] sm:$0xff] }
 0x27f   : > { %2472 = vmatmul.msk.f32.gmra.mxu1 %vm1724_vm9, %v1697_v11  ;;  %2480 = vmatmul.msk.f32.gmra.mxu2 %vm1724_vm9, %v1705_v23  ;;  %v1647_v12 = vsel %vm1621_vm5, %v3916_v53, %v1155_v5  ;;  %v2396_v53 = vld [vmem:[%s2711_s25 + $0x198] sm:$0xff]  ;;  %v2389_v5 = vld [vmem:[%s2711_s25 + $0x140] sm:$0xff] }
 0x280   : > { %v1680_v61 = vsel %vm1654_vm7, %v1647_v12, %v4119_v32 }
 0x283   : > { %1370 = vrot.lane.b32.xlu2 %v2435_v63, %s2639_s5  ;;  %1148 = vrot.lane.b32.xlu1 %v2388_v50, %s2637_s3  ;;  %v2453_v63 = vld [vmem:[%s2711_s25 + $0x142] sm:$0xff] }
 0x284   : > { %1258 = vrot.lane.b32.xlu0 %v2411_v10, %s2638_s4  ;;  %v2397_v50 = vld [vmem:[%s2711_s25 + $0x1a0] sm:$0xff] }
 0x285   : > { %v1237_v29 = vpop.permute.xlu2 %1236  ;;  %v1235_v25 = vpop.permute.xlu1 %1234  ;;  %v2421_v10 = vld [vmem:[%s2711_s25 + $0x141] sm:$0xff] }
 0x286   : > { %v1411_v40 = vpop.permute.xlu0 %1410  ;;  %v1656_v8 = vsel %vm1654_vm7, %v3873_v62, %v1235_v25  ;;  %v1657_v62 = vsel %vm1654_vm7, %v4004_v30, %v1237_v29  ;;  %v2380_v30 = vld [vmem:[%s2711_s25 + $0xd8] sm:$0xff] }
 0x287   : > { %v1713_v7 = vsel %vm1687_vm8, %v1680_v61, %v1411_v40 }
 0x288   : > { %2488 = vmatmul.msk.f32.gmra.mxu3 %vm1724_vm9, %v1713_v7  ;;  %v2381_v7 = vld [vmem:[%s2711_s25 + $0xe0] sm:$0xff] }
 0x28b   : > { %1164 = vrot.lane.b32.xlu2 %v2396_v53, %s2637_s3  ;;  %1276 = vrot.lane.b32.xlu1 %v2420_v57, %s2638_s4  ;;  %v2461_v53 = vld [vmem:[%s2711_s25 + $0x1a2] sm:$0xff] }
 0x28c   : > { %1386 = vrot.lane.b32.xlu0 %v2443_v22, %s2639_s5  ;;  %v2429_v57 = vld [vmem:[%s2711_s25 + $0x1a1] sm:$0xff] }
 0x28d   : > { %v1365_v16 = vpop.permute.xlu2 %1364  ;;  %v1363_v32 = vpop.permute.xlu1 %1362 }
 0x28e   : > { %v1141_v37 = vpop.permute.xlu0 %1140  ;;  %v1689_v2 = vsel %vm1687_vm8, %v1656_v8, %v1363_v32  ;;  %v1690_v46 = vsel %vm1687_vm8, %v1657_v62, %v1365_v16  ;;  %v2405_v62 = vld [vmem:[%s2711_s25 + $0x81] sm:$0xff] }
 0x28f   : > { %2464 = vmatmul.msk.f32.gmra.mxu0 %vm1724_vm9, %v1689_v2  ;;  %v1640_v3 = vsel %vm1621_vm5, %v4840_v1, %v1141_v37  ;;  %v2445_v1 = vld [vmem:[%s2711_s25 + $0xe2] sm:$0xff] }
 0x293   : > { %1420 = vrot.lane.b32.xlu2 %v2460_v58, %s2639_s5  ;;  %1292 = vrot.lane.b32.xlu1 %v2428_v41, %s2638_s4 }
 0x294   : > { %1404 = vrot.lane.b32.xlu0 %v2452_v17, %s2639_s5  ;;  %v2437_v17 = vld [vmem:[%s2711_s25 + $0x82] sm:$0xff] }
 0x295   : > { %v1159_v27 = vpop.permute.xlu2 %1158  ;;  %v1157_v19 = vpop.permute.xlu1 %1156 }
 0x296   : > { %v1269_v55 = vpop.permute.xlu0 %1268  ;;  %v1648_v15 = vsel %vm1621_vm5, %v3912_v60, %v1157_v19 }
 0x297   : > { %v1673_v18 = vsel %vm1654_vm7, %v1640_v3, %v1269_v55  ;;  %2465 = vmatmul.msk.f32.gmra.mxu0 %vm1724_vm9, %v1690_v46 }
 0x298   : > { %v1706_v48 = vsel %vm1687_vm8, %v1673_v18, %v1397_v52  ;;  %v2444_v52 = vld [vmem:[%s2711_s25 + $0xda] sm:$0xff] }
 0x299   : > { %2481 = vmatmul.msk.f32.gmra.mxu2 %vm1724_vm9, %v1706_v48 }
 0x29b   : > { %1260 = vrot.lane.b32.xlu2 %v2412_v4, %s2638_s4  ;;  %1244 = vrot.lane.b32.xlu1 %v2404_v36, %s2638_s4 }
 0x29c   : > { %1132 = vrot.lane.b32.xlu0 %v2380_v30, %s2637_s3  ;;  %v2640_v30 = vmov -inf  }
 0x29d   : > { %v1415_v42 = vpop.permute.xlu2 %1414  ;;  %v1413_v39 = vpop.permute.xlu1 %1412  ;;  %1967 = vst.msk [vmem:[#allocation2 + $0xe0] sm:$0xff] %vm1938_vm10, %v2640_v30 }
 0x29e   : > { %v1285_v51 = vpop.permute.xlu0 %1284  ;;  %1939 = vst.msk [vmem:[#allocation2] sm:$0xff] %vm1938_vm10, %v2640_v30 }
 0x29f   : > { %v1681_v26 = vsel %vm1654_vm7, %v1648_v15, %v1285_v51  ;;  %1940 = vst.msk [vmem:[#allocation2 + $0x8] sm:$0xff] %vm1938_vm10, %v2640_v30 }
 0x2a0   : > { %v1714_v44 = vsel %vm1687_vm8, %v1681_v26, %v1413_v39  ;;  %1941 = vst.msk [vmem:[#allocation2 + $0x10] sm:$0xff] %vm1938_vm10, %v2640_v30 }
 0x2a1   : > { %2489 = vmatmul.msk.f32.gmra.mxu3 %vm1724_vm9, %v1714_v44  ;;  %1942 = vst.msk [vmem:[#allocation2 + $0x18] sm:$0xff] %vm1938_vm10, %v2640_v30 }
 0x2a2   : > { %1943 = vst.msk [vmem:[#allocation2 + $0x20] sm:$0xff] %vm1938_vm10, %v2640_v30 }
 0x2a3   : > { %1388 = vrot.lane.b32.xlu2 %v2444_v52, %s2639_s5  ;;  %1372 = vrot.lane.b32.xlu1 %v2436_v14, %s2639_s5  ;;  %1944 = vst.msk [vmem:[#allocation2 + $0x28] sm:$0xff] %vm1938_vm10, %v2640_v30 }
 0x2a4   : > { %1150 = vrot.lane.b32.xlu0 %v2389_v5, %s2637_s3  ;;  %1945 = vst.msk [vmem:[#allocation2 + $0x30] sm:$0xff] %vm1938_vm10, %v2640_v30 }
 0x2a5   : > { %v1145_v11 = vpop.permute.xlu2 %1144  ;;  %v1143_v60 = vpop.permute.xlu1 %1142  ;;  %1946 = vst.msk [vmem:[#allocation2 + $0x38] sm:$0xff] %vm1938_vm10, %v2640_v30 }
 0x2a6   : > { %v1253_v23 = vpop.permute.xlu0 %1252  ;;  %v1641_v22 = vsel %vm1621_vm5, %v3845_v43, %v1143_v60  ;;  %1947 = vst.msk [vmem:[#allocation2 + $0x40] sm:$0xff] %vm1938_vm10, %v2640_v30 }
 0x2a7   : > { %v1665_v25 = vsel %vm1654_vm7, %v3982_v33, %v1253_v23  ;;  %v1649_v33 = vsel %vm1621_vm5, %v3804_v54, %v1159_v27  ;;  %v2413_v54 = vld [vmem:[%s2711_s25 + $0xe1] sm:$0xff]  ;;  %1948 = vst.msk [vmem:[#allocation2 + $0x48] sm:$0xff] %vm1938_vm10, %v2640_v30  ;;  %s4496_s25 = scalar_lea.vmem [#allocation3], %s2268_s24 }
 0x2a8   : > { %1949 = vst.msk [vmem:[#allocation2 + $0x50] sm:$0xff] %vm1938_vm10, %v2640_v30  ;;  %s2199_s13 = sshll.u32 %s4496_s25, 4  ;;  %s2200_s13 = int_to_ptr.vmem [resolvable:$true] %s2199_s13 }
 0x2a9   : > { %1950 = vst.msk [vmem:[#allocation2 + $0x58] sm:$0xff] %vm1938_vm10, %v2640_v30 }
 0x2aa   : > { %1951 = vst.msk [vmem:[#allocation2 + $0x60] sm:$0xff] %vm1938_vm10, %v2640_v30 }
 0x2ab   : > { %1406 = vrot.lane.b32.xlu2 %v2453_v63, %s2639_s5  ;;  %1166 = vrot.lane.b32.xlu1 %v2397_v50, %s2637_s3  ;;  %1952 = vst.msk [vmem:[#allocation2 + $0x68] sm:$0xff] %vm1938_vm10, %v2640_v30 }
 0x2ac   : > { %1278 = vrot.lane.b32.xlu0 %v2421_v10, %s2638_s4  ;;  %1953 = vst.msk [vmem:[#allocation2 + $0x70] sm:$0xff] %vm1938_vm10, %v2640_v30 }
 0x2ad   : > { %v1273_v12 = vpop.permute.xlu2 %1272  ;;  %v1271_v29 = vpop.permute.xlu1 %1270  ;;  %1954 = vst.msk [vmem:[#allocation2 + $0x78] sm:$0xff] %vm1938_vm10, %v2640_v30 }
 0x2ae   : > { %v1381_v40 = vpop.permute.xlu0 %1380  ;;  %v1674_v32 = vsel %vm1654_vm7, %v1641_v22, %v1271_v29  ;;  %1955 = vst.msk [vmem:[#allocation2 + $0x80] sm:$0xff] %vm1938_vm10, %v2640_v30 }
 0x2af   : > { %v1698_v61 = vsel %vm1687_vm8, %v1665_v25, %v1381_v40  ;;  %1956 = vst.msk [vmem:[#allocation2 + $0x88] sm:$0xff] %vm1938_vm10, %v2640_v30 }
 0x2b0   : > { %2473 = vmatmul.msk.f32.gmra.mxu1 %vm1724_vm9, %v1698_v61  ;;  %1957 = vst.msk [vmem:[#allocation2 + $0x90] sm:$0xff] %vm1938_vm10, %v2640_v30 }
 0x2b1   : > { %1958 = vst.msk [vmem:[#allocation2 + $0x98] sm:$0xff] %vm1938_vm10, %v2640_v30 }
 0x2b2   : > { %1959 = vst.msk [vmem:[#allocation2 + $0xa0] sm:$0xff] %vm1938_vm10, %v2640_v30 }
 0x2b3   : > { %1134 = vrot.lane.b32.xlu2 %v2381_v7, %s2637_s3  ;;  %1422 = vrot.lane.b32.xlu1 %v2461_v53, %s2639_s5  ;;  %1960 = vst.msk [vmem:[#allocation2 + $0xa8] sm:$0xff] %vm1938_vm10, %v2640_v30  ;;  %s2187_s3 = scalar_lea.sflag [#allocation4], %s134_s23 }
 0x2b4   : > { %1294 = vrot.lane.b32.xlu0 %v2429_v57, %s2638_s4  ;;  %1961 = vst.msk [vmem:[#allocation2 + $0xb0] sm:$0xff] %vm1938_vm10, %v2640_v30 }
 0x2b5   : > { %v1289_v8 = vpop.permute.xlu2 %1288  ;;  %v1287_v16 = vpop.permute.xlu1 %1286  ;;  %1962 = vst.msk [vmem:[#allocation2 + $0xb8] sm:$0xff] %vm1938_vm10, %v2640_v30 }
 0x2b6   : > { %v1682_v37 = vsel %vm1654_vm7, %v1649_v33, %v1287_v16  ;;  %v1399_v2 = vpop.permute.xlu0 %1398  ;;  %1963 = vst.msk [vmem:[#allocation2 + $0xc0] sm:$0xff] %vm1938_vm10, %v2640_v30 }
 0x2b7   : > { %v1707_v58 = vsel %vm1687_vm8, %v1674_v32, %v1399_v2  ;;  %v1715_v41 = vsel %vm1687_vm8, %v1682_v37, %v1415_v42  ;;  %1964 = vst.msk [vmem:[#allocation2 + $0xc8] sm:$0xff] %vm1938_vm10, %v2640_v30 }
 0x2b8   : > { %2482 = vmatmul.msk.f32.gmra.mxu2 %vm1724_vm9, %v1707_v58  ;;  %2490 = vmatmul.msk.f32.gmra.mxu3 %vm1724_vm9, %v1715_v41  ;;  %1965 = vst.msk [vmem:[#allocation2 + $0xd0] sm:$0xff] %vm1938_vm10, %v2640_v30 }
 0x2b9   : > { %1966 = vst.msk [vmem:[#allocation2 + $0xd8] sm:$0xff] %vm1938_vm10, %v2640_v30 }
 0x2ba   : > { %1968 = vst.msk [vmem:[#allocation2 + $0xe8] sm:$0xff] %vm1938_vm10, %v2640_v30 }
 0x2bb   : > { %1262 = vrot.lane.b32.xlu1 %v2413_v54, %s2638_s4  ;;  %1374 = vrot.lane.b32.xlu2 %v2437_v17, %s2639_s5  ;;  %1969 = vst.msk [vmem:[#allocation2 + $0xf0] sm:$0xff] %vm1938_vm10, %v2640_v30 }
 0x2bc   : > { %1246 = vrot.lane.b32.xlu0 %v2405_v62, %s2638_s4  ;;  %1970 = vst.msk [vmem:[#allocation2 + $0xf8] sm:$0xff] %vm1938_vm10, %v2640_v30  ;;  %s2582_s4 = sshra.s32 %s2202_s30, 4  ;;  %s2583_s4 = int_to_ptr.hbm [resolvable:$true] %s2582_s4 }
 0x2bd   : > { %v1257_v43 = vpop.permute.xlu2 %1256  ;;  %v1255_v27 = vpop.permute.xlu1 %1254  ;;  %1971 = vst.msk [vmem:[#allocation2 + $0x100] sm:$0xff] %vm1938_vm10, %v2640_v30  ;;  %p2589_p0 = scmp.lt.s32.totalorder %s2583_s4, %s4569_s2 }
 0x2be   : > { %v1239_v19 = vpop.permute.xlu0 %1238  ;;  %v1666_v3 = vsel %vm1654_vm7, %v4098_v56, %v1255_v27  ;;  %v1642_v56 = vsel %vm1621_vm5, %v3841_v24, %v1145_v11  ;;  %v1667_v42 = vsel %vm1654_vm7, %v4095_v0, %v1257_v43  ;;  %1972 = vst.msk [vmem:[#allocation2 + $0x108] sm:$0xff] %vm1938_vm10, %v2640_v30 }
 0x2bf   : > { %v1658_v18 = vsel %vm1654_vm7, %v4000_v49, %v1239_v19  ;;  %v1675_v49 = vsel %vm1654_vm7, %v1642_v56, %v1273_v12  ;;  %1973 = vst.msk [vmem:[#allocation2 + $0x110] sm:$0xff] %vm1938_vm10, %v2640_v30 }
 0x2c0   : > { %1974 = vst.msk [vmem:[#allocation2 + $0x118] sm:$0xff] %vm1938_vm10, %v2640_v30 }
 0x2c1   : > { %1975 = vst.msk [vmem:[#allocation2 + $0x120] sm:$0xff] %vm1938_vm10, %v2640_v30 }
 0x2c2   : > { %1976 = vst.msk [vmem:[#allocation2 + $0x128] sm:$0xff] %vm1938_vm10, %v2640_v30 }
 0x2c3   : > { %1977 = vst.msk [vmem:[#allocation2 + $0x130] sm:$0xff] %vm1938_vm10, %v2640_v30 }
 0x2c4   : > { %1390 = vrot.lane.b32.xlu0 %v2445_v1, %s2639_s5  ;;  %1978 = vst.msk [vmem:[#allocation2 + $0x138] sm:$0xff] %vm1938_vm10, %v2640_v30  ;;  %s2584_s5 = scalar_lea.hbm %s2583_s4, 64 }
 0x2c5   : > { %v1385_v55 = vpop.permute.xlu2 %1384  ;;  %v1383_v46 = vpop.permute.xlu1 %1382  ;;  %1979 = vst.msk [vmem:[#allocation2 + $0x140] sm:$0xff] %vm1938_vm10, %v2640_v30  ;;  %p2585_p11 = scmp.ne.s32.totalorder %s2583_s4, %s2584_s5  ;;  %p2590_p1 = scmp.lt.s32.totalorder %s2588_s8, %s2584_s5 }
 0x2c6   : > { %v1367_v48 = vpop.permute.xlu0 %1366  ;;  %v1699_v4 = vsel %vm1687_vm8, %v1666_v3, %v1383_v46  ;;  %v1700_v51 = vsel %vm1687_vm8, %v1667_v42, %v1385_v55  ;;  %1980 = vst.msk [vmem:[#allocation2 + $0x148] sm:$0xff] %vm1938_vm10, %v2640_v30 }
 0x2c7   : > { %v1691_v36 = vsel %vm1687_vm8, %v1658_v18, %v1367_v48  ;;  %2474 = vmatmul.msk.f32.gmra.mxu1 %vm1724_vm9, %v1699_v4  ;;  %1981 = vst.msk [vmem:[#allocation2 + $0x150] sm:$0xff] %vm1938_vm10, %v2640_v30  ;;  %p2586_p12 = pnand %p2585_p11, %p2696_p5  ;;  %p2591_p2 = por %p2590_p1, %p2589_p0 }
 0x2c8   : > { %2466 = vmatmul.msk.f32.gmra.mxu0 %vm1724_vm9, %v1691_v36  ;;  %1982 = vst.msk [vmem:[#allocation2 + $0x158] sm:$0xff] %vm1938_vm10, %v2640_v30 }
 0x2c9   : > { %1983 = vst.msk [vmem:[#allocation2 + $0x160] sm:$0xff] %vm1938_vm10, %v2640_v30  ;;  %p2587_p13 = pneg %p2586_p12 }
 0x2ca   : > { %1984 = vst.msk [vmem:[#allocation2 + $0x168] sm:$0xff] %vm1938_vm10, %v2640_v30 }
 0x2cb   : > { %1985 = vst.msk [vmem:[#allocation2 + $0x170] sm:$0xff] %vm1938_vm10, %v2640_v30  ;;  %p2592_p3 = pnand %p2591_p2, %p2587_p13 }
 0x2cc   : > { %1986 = vst.msk [vmem:[#allocation2 + $0x178] sm:$0xff] %vm1938_vm10, %v2640_v30 }
 0x2cd   : > { %v1401_v39 = vpop.permute.xlu1 %1400  ;;  %v1403_v24 = vpop.permute.xlu2 %1402  ;;  %1987 = vst.msk [vmem:[#allocation2 + $0x180] sm:$0xff] %vm1938_vm10, %v2640_v30 }
 0x2ce   : > { %v1161_v15 = vpop.permute.xlu0 %1160  ;;  %v1708_v26 = vsel %vm1687_vm8, %v1675_v49, %v1401_v39  ;;  %1988 = vst.msk [vmem:[#allocation2 + $0x188] sm:$0xff] %vm1938_vm10, %v2640_v30 }
 0x2cf   : > { %2475 = vmatmul.msk.f32.gmra.mxu1 %vm1724_vm9, %v1700_v51  ;;  %2483 = vmatmul.msk.f32.gmra.mxu2 %vm1724_vm9, %v1708_v26  ;;  %v1650_v0 = vsel %vm1621_vm5, %v3960_v28, %v1161_v15  ;;  %1989 = vst.msk [vmem:[#allocation2 + $0x190] sm:$0xff] %vm1938_vm10, %v2640_v30 }
 0x2d0   : > { %v1683_v14 = vsel %vm1654_vm7, %v1650_v0, %v1289_v8 }
 0x2d5   : > { %v1241_v44 = vpop.permute.xlu1 %1240  ;;  %v1243_v28 = vpop.permute.xlu2 %1242 }
 0x2d6   : > { %v1417_v52 = vpop.permute.xlu0 %1416  ;;  %v1659_v11 = vsel %vm1654_vm7, %v3909_v20, %v1241_v44  ;;  %v1660_v50 = vsel %vm1654_vm7, %v4052_v6, %v1243_v28 }
 0x2d7   : > { %v1716_v5 = vsel %vm1687_vm8, %v1683_v14, %v1417_v52 }
 0x2d8   : > { %2491 = vmatmul.msk.f32.gmra.mxu3 %vm1724_vm9, %v1716_v5 }
 0x2dd   : > { %v1369_v60 = vpop.permute.xlu1 %1368  ;;  %v1371_v20 = vpop.permute.xlu2 %1370 }
 0x2de   : > { %v1147_v23 = vpop.permute.xlu0 %1146  ;;  %v1692_v63 = vsel %vm1687_vm8, %v1659_v11, %v1369_v60  ;;  %v1693_v25 = vsel %vm1687_vm8, %v1660_v50, %v1371_v20 }
 0x2df   : > { %2467 = vmatmul.msk.f32.gmra.mxu0 %vm1724_vm9, %v1692_v63  ;;  %v1643_v12 = vsel %vm1621_vm5, %v3740_v38, %v1147_v23 }
 0x2e5   : > { %v1163_v10 = vpop.permute.xlu1 %1162  ;;  %v1165_v22 = vpop.permute.xlu2 %1164 }
 0x2e6   : > { %v1275_v29 = vpop.permute.xlu0 %1274  ;;  %v1651_v7 = vsel %vm1621_vm5, %v3957_v59, %v1163_v10  ;;  %v1652_v19 = vsel %vm1621_vm5, %v3838_v13, %v1165_v22 }
 0x2e7   : > { %v1676_v40 = vsel %vm1654_vm7, %v1643_v12, %v1275_v29  ;;  %2468 = vmatmul.msk.f32.gmra.mxu0 %vm1724_vm9, %v1693_v25 }
 0x2e8   : > { %v1709_v6 = vsel %vm1687_vm8, %v1676_v40, %v1403_v24  ;;  %v4841_v40 = vld [vmem:[#allocation33_spill] sm:$0xff] }
 0x2e9   : > { %2484 = vmatmul.msk.f32.gmra.mxu2 %vm1724_vm9, %v1709_v6 }
 0x2eb   : > { %v1890_v38 = vpop.f32.mrf.mxu2  ;;  %v1914_v41 = vpop.f32.mrf.mxu3 }
 0x2ec   : > { %2010 = vst.msk [vmem:[#allocation2 + $0xe0] sm:$0xff] %vm1938_vm10, %v1890_v38 }
 0x2ed   : > { %v1419_v61 = vpop.permute.xlu1 %1418  ;;  %v1421_v32 = vpop.permute.xlu2 %1420  ;;  %2018 = vst.msk [vmem:[#allocation2 + $0x140] sm:$0xff] %vm1938_vm10, %v1914_v41 }
 0x2ee   : > { %v1291_v53 = vpop.permute.xlu0 %1290 }
 0x2ef   : > { %v1684_v57 = vsel %vm1654_vm7, %v1651_v7, %v1291_v53 }
 0x2f0   : > { %v1717_v33 = vsel %vm1687_vm8, %v1684_v57, %v1419_v61 }
 0x2f1   : > { %2492 = vmatmul.msk.f32.gmra.mxu3 %vm1724_vm9, %v1717_v33  ;;  %v2061_v33 = vld [vmem:[#allocation2 + $0x8] ss:$2 sm:$0xff] }
 0x2f4   : > { %v1866_v16 = vpop.f32.mrf.mxu1 }
 0x2f5   : > { %v1149_v59 = vpop.permute.xlu1 %1148  ;;  %v1842_v17 = vpop.f32.mrf.mxu0  ;;  %2002 = vst.msk [vmem:[#allocation2 + $0x80] sm:$0xff] %vm1938_vm10, %v1866_v16 }
 0x2f6   : > { %v1259_v8 = vpop.permute.xlu0 %1258  ;;  %1994 = vst.msk [vmem:[#allocation2 + $0x20] sm:$0xff] %vm1938_vm10, %v1842_v17  ;;  %v1261_v27 = vpop.permute.xlu2 %1260 }
 0x2f7   : > { %v1668_v37 = vsel %vm1654_vm7, %v3996_v35, %v1259_v8  ;;  %v1644_v35 = vsel %vm1621_vm5, %v3880_v47, %v1149_v59 }
 0x2fc   : > { %v1869_v62 = vpop.f32.mrf.mxu1 }
 0x2fd   : > { %v1277_v2 = vpop.permute.xlu1 %1276  ;;  %2003 = vst.msk [vmem:[#allocation2 + $0x88] sm:$0xff] %vm1938_vm10, %v1869_v62 }
 0x2fe   : > { %v1387_v58 = vpop.permute.xlu0 %1386  ;;  %v1677_v1 = vsel %vm1654_vm7, %v1644_v35, %v1277_v2  ;;  %v1389_v56 = vpop.permute.xlu2 %1388  ;;  %v2112_v2 = vld [vmem:[#allocation2 + $0x9] ss:$2 sm:$0xff] }
 0x2ff   : > { %v1701_v54 = vsel %vm1687_vm8, %v1668_v37, %v1387_v58 }
 0x300   : > { %2476 = vmatmul.msk.f32.gmra.mxu1 %vm1724_vm9, %v1701_v54 }
 0x302   : > { %v1893_v43 = vpop.f32.mrf.mxu2 }
 0x303   : > { %2011 = vst.msk [vmem:[#allocation2 + $0xe8] sm:$0xff] %vm1938_vm10, %v1893_v43 }
 0x305   : > { %v1293_v3 = vpop.permute.xlu1 %1292 }
 0x306   : > { %v1405_v55 = vpop.permute.xlu0 %1404  ;;  %v1685_v46 = vsel %vm1654_vm7, %v1652_v19, %v1293_v3 }
 0x307   : > { %v1710_v18 = vsel %vm1687_vm8, %v1677_v1, %v1405_v55  ;;  %v1718_v48 = vsel %vm1687_vm8, %v1685_v46, %v1421_v32 }
 0x308   : > { %2485 = vmatmul.msk.f32.gmra.mxu2 %vm1724_vm9, %v1710_v18  ;;  %2493 = vmatmul.msk.f32.gmra.mxu3 %vm1724_vm9, %v1718_v48 }
 0x30b   : > { %v1917_v47 = vpop.f32.mrf.mxu3 }
 0x30c   : > { %v1845_v4 = vpop.f32.mrf.mxu0  ;;  %2019 = vst.msk [vmem:[#allocation2 + $0x148] sm:$0xff] %vm1938_vm10, %v1917_v47 }
 0x30d   : > { %v1245_v13 = vpop.permute.xlu1 %1244  ;;  %1995 = vst.msk [vmem:[#allocation2 + $0x28] sm:$0xff] %vm1938_vm10, %v1845_v4 }
 0x30e   : > { %v1133_v36 = vpop.permute.xlu0 %1132  ;;  %v1661_v15 = vsel %vm1654_vm7, %v4046_v45, %v1245_v13 }
 0x30f   : > { %v1636_v30 = vsel %vm1621_vm5, %v3773_v34, %v1133_v36  ;;  %v1407_v34 = vpop.permute.xlu2 %1406 }
 0x310   : > { %v1669_v49 = vsel %vm1654_vm7, %v1636_v30, %v1261_v27 }
 0x311   : > { %v1702_v42 = vsel %vm1687_vm8, %v1669_v49, %v1389_v56 }
 0x312   : > { %2477 = vmatmul.msk.f32.gmra.mxu1 %vm1724_vm9, %v1702_v42 }
 0x314   : > { %v1848_v39 = vpop.f32.mrf.mxu0  ;;  %v2029_v59 = vld [vmem:[#allocation2 + $0x1f] ss:$2 sm:$0xff]  ;;  %v2063_v8 = vld [vmem:[#allocation2 + $0x20] ss:$2 sm:$0xff] }
 0x315   : > { %v1373_v51 = vpop.permute.xlu1 %1372  ;;  %1996 = vst.msk [vmem:[#allocation2 + $0x38] sm:$0xff] %vm1938_vm10, %v1848_v39  ;;  %v2095_v37 = vmax.f32 %v2029_v59, %v2063_v8  ;;  %v2114_v58 = vld [vmem:[#allocation2 + $0x21] ss:$2 sm:$0xff] }
 0x316   : > { %v1151_v26 = vpop.permute.xlu0 %1150  ;;  %v1694_v24 = vsel %vm1687_vm8, %v1661_v15, %v1373_v51 }
 0x317   : > { %2469 = vmatmul.msk.f32.gmra.mxu0 %vm1724_vm9, %v1694_v24  ;;  %v1645_v44 = vsel %vm1621_vm5, %v3876_v9, %v1151_v26  ;;  %v1135_v11 = vpop.permute.xlu2 %1134  ;;  %v2146_v54 = vmax.f32 %v2095_v37, %v2114_v58 }
 0x318   : > { %v1637_v6 = vsel %vm1621_vm5, %v4841_v40, %v1135_v11 }
 0x31c   : > { %v1896_v0 = vpop.f32.mrf.mxu2 }
 0x31d   : > { %2012 = vst.msk [vmem:[#allocation2 + $0xf8] sm:$0xff] %vm1938_vm10, %v1896_v0  ;;  %v1167_v52 = vpop.permute.xlu1 %1166  ;;  %v2087_v0 = vld [vmem:[#allocation2 + $0x140] ss:$2 sm:$0xff] }
 0x31e   : > { %v1279_v14 = vpop.permute.xlu0 %1278  ;;  %v1653_v60 = vsel %vm1621_vm5, %v3986_v31, %v1167_v52 }
 0x31f   : > { %v1678_v5 = vsel %vm1654_vm7, %v1645_v44, %v1279_v14  ;;  %v1375_v10 = vpop.permute.xlu2 %1374 }
 0x320   : > { %v1711_v45 = vsel %vm1687_vm8, %v1678_v5, %v1407_v34  ;;  %v2053_v34 = vld [vmem:[#allocation2 + $0x13f] ss:$2 sm:$0xff] }
 0x321   : > { %2486 = vmatmul.msk.f32.gmra.mxu2 %vm1724_vm9, %v1711_v45  ;;  %v2107_v45 = vmax.f32 %v2053_v34, %v2087_v0 }
 0x324   : > { %v1920_v28 = vpop.f32.mrf.mxu3 }
 0x325   : > { %2020 = vst.msk [vmem:[#allocation2 + $0x158] sm:$0xff] %vm1938_vm10, %v1920_v28  ;;  %v1423_v23 = vpop.permute.xlu1 %1422 }
 0x326   : > { %v1295_v63 = vpop.permute.xlu0 %1294 }
 0x327   : > { %v1686_v20 = vsel %vm1654_vm7, %v1653_v60, %v1295_v63 }
 0x328   : > { %v1719_v9 = vsel %vm1687_vm8, %v1686_v20, %v1423_v23 }
 0x329   : > { %2494 = vmatmul.msk.f32.gmra.mxu3 %vm1724_vm9, %v1719_v9 }
 0x32d   : > { %v1872_v50 = vpop.f32.mrf.mxu1  ;;  %v1263_v31 = vpop.permute.xlu1 %1262 }
 0x32e   : > { %2004 = vst.msk [vmem:[#allocation2 + $0x98] sm:$0xff] %vm1938_vm10, %v1872_v50  ;;  %v1247_v12 = vpop.permute.xlu0 %1246  ;;  %v1670_v38 = vsel %vm1654_vm7, %v1637_v6, %v1263_v31  ;;  %v2138_v50 = vld [vmem:[#allocation2 + $0x141] ss:$2 sm:$0xff] }
 0x32f   : > { %v1662_v29 = vsel %vm1654_vm7, %v3954_v21, %v1247_v12  ;;  %v2027_v21 = vld [vmem:[#allocation2 + $0x7] ss:$2 sm:$0xff] }
 0x330   : > { %v1695_v25 = vsel %vm1687_vm8, %v1662_v29, %v1375_v10  ;;  %v2094_v32 = vmax.f32 %v2027_v21, %v2061_v33  ;;  %v2037_v21 = vld [vmem:[#allocation2 + $0x7f] ss:$2 sm:$0xff]  ;;  %v2071_v33 = vld [vmem:[#allocation2 + $0x80] ss:$2 sm:$0xff] }
 0x331   : > { %2470 = vmatmul.msk.f32.gmra.mxu0 %vm1724_vm9, %v1695_v25 }
 0x332   : > { %v2145_v41 = vmax.f32 %v2094_v32, %v2112_v2 }
 0x334   : > { %v2162_v19 = vmax.f32 %v2145_v41, %v2146_v54  ;;  %v2099_v54 = vmax.f32 %v2037_v21, %v2071_v33 }
 0x336   : > { %v1391_v61 = vpop.permute.xlu0 %1390 }
 0x337   : > { %v1703_v7 = vsel %vm1687_vm8, %v1670_v38, %v1391_v61  ;;  %v2158_v38 = vmax.f32 %v2107_v45, %v2138_v50 }
 0x338   : > { %2478 = vmatmul.msk.f32.gmra.mxu1 %vm1724_vm9, %v1703_v7 }
 0x33b   : > { %v1899_v53 = vpop.f32.mrf.mxu2  ;;  %v1923_v57 = vpop.f32.mrf.mxu3 }
 0x33c   : > { %2013 = vst.msk [vmem:[#allocation2 + $0x100] sm:$0xff] %vm1938_vm10, %v1899_v53 }
 0x33d   : > { %2021 = vst.msk [vmem:[#allocation2 + $0x160] sm:$0xff] %vm1938_vm10, %v1923_v57 }
 0x343   : > { %v2047_v51 = vld [vmem:[#allocation2 + $0xf7] ss:$2 sm:$0xff]  ;;  %v2081_v26 = vld [vmem:[#allocation2 + $0xf8] ss:$2 sm:$0xff] }
 0x344   : > { %v1875_v22 = vpop.f32.mrf.mxu1  ;;  %v2104_v44 = vmax.f32 %v2047_v51, %v2081_v26  ;;  %v2055_v52 = vld [vmem:[#allocation2 + $0x157] ss:$2 sm:$0xff]  ;;  %v2089_v14 = vld [vmem:[#allocation2 + $0x158] ss:$2 sm:$0xff] }
 0x345   : > { %v1851_v16 = vpop.f32.mrf.mxu0  ;;  %2005 = vst.msk [vmem:[#allocation2 + $0xa0] sm:$0xff] %vm1938_vm10, %v1875_v22  ;;  %v2132_v28 = vld [vmem:[#allocation2 + $0xf9] ss:$2 sm:$0xff]  ;;  %v2108_v12 = vmax.f32 %v2055_v52, %v2089_v14 }
 0x346   : > { %1997 = vst.msk [vmem:[#allocation2 + $0x40] sm:$0xff] %vm1938_vm10, %v1851_v16  ;;  %v4511_v10 = vmax.f32 %v2104_v44, %v2132_v28  ;;  %v2140_v57 = vld [vmem:[#allocation2 + $0x159] ss:$2 sm:$0xff] }
 0x347   : > { %v2159_v22 = vmax.f32 %v2108_v12, %v2140_v57  ;;  %v2045_v26 = vld [vmem:[#allocation2 + $0xdf] ss:$2 sm:$0xff] }
 0x34c   : > { %v1878_v17 = vpop.f32.mrf.mxu1  ;;  %v2039_v37 = vld [vmem:[#allocation2 + $0x97] ss:$2 sm:$0xff]  ;;  %v2073_v2 = vld [vmem:[#allocation2 + $0x98] ss:$2 sm:$0xff] }
 0x34d   : > { %v2031_v62 = vld [vmem:[#allocation2 + $0x37] ss:$2 sm:$0xff]  ;;  %v2065_v43 = vld [vmem:[#allocation2 + $0x38] ss:$2 sm:$0xff]  ;;  %2006 = vst.msk [vmem:[#allocation2 + $0xb0] sm:$0xff] %vm1938_vm10, %v1878_v17 }
 0x34e   : > { %v2096_v27 = vmax.f32 %v2031_v62, %v2065_v43  ;;  %v2116_v35 = vld [vmem:[#allocation2 + $0x39] ss:$2 sm:$0xff] }
 0x34f   : > { %v2124_v34 = vld [vmem:[#allocation2 + $0x99] ss:$2 sm:$0xff] }
 0x350   : > { %v4492_v1 = vmax.f32 %v2096_v27, %v2116_v35 }
 0x352   : > { %v2170_v3 = vmax.f32 %v2162_v19, %v4492_v1  ;;  %v1902_v55 = vpop.f32.mrf.mxu2 }
 0x353   : > { %2014 = vst.msk [vmem:[#allocation2 + $0x110] sm:$0xff] %vm1938_vm10, %v1902_v55 }
 0x354   : > { %2178 = vst.msk [vmem:[%s4496_s25] sm:$0xff] %vm1938_vm10, %v2170_v3 }
 0x35b   : > { %v1926_v46 = vpop.f32.mrf.mxu3 }
 0x35c   : > { %2022 = vst.msk [vmem:[#allocation2 + $0x170] sm:$0xff] %vm1938_vm10, %v1926_v46  ;;  %v1854_v18 = vpop.f32.mrf.mxu0 }
 0x35d   : > { %1998 = vst.msk [vmem:[#allocation2 + $0x50] sm:$0xff] %vm1938_vm10, %v1854_v18 }
 0x364   : > { %v1857_v48 = vpop.f32.mrf.mxu0 }
 0x365   : > { %1999 = vst.msk [vmem:[#allocation2 + $0x58] sm:$0xff] %vm1938_vm10, %v1857_v48 }
 0x36c   : > { %v1905_v47 = vpop.f32.mrf.mxu2  ;;  %v2033_v25 = vld [vmem:[#allocation2 + $0x4f] ss:$2 sm:$0xff]  ;;  %v2067_v31 = vld [vmem:[#allocation2 + $0x50] ss:$2 sm:$0xff] }
 0x36d   : > { %2015 = vst.msk [vmem:[#allocation2 + $0x118] sm:$0xff] %vm1938_vm10, %v1905_v47  ;;  %v2097_v59 = vmax.f32 %v2033_v25, %v2067_v31  ;;  %v2118_v17 = vld [vmem:[#allocation2 + $0x51] ss:$2 sm:$0xff]  ;;  %v2122_v47 = vld [vmem:[#allocation2 + $0x81] ss:$2 sm:$0xff] }
 0x36f   : > { %v2148_v27 = vmax.f32 %v2097_v59, %v2118_v17 }
 0x374   : > { %v1929_v4 = vpop.f32.mrf.mxu3  ;;  %v2049_v42 = vld [vmem:[#allocation2 + $0x10f] ss:$2 sm:$0xff]  ;;  %v2083_v39 = vld [vmem:[#allocation2 + $0x110] ss:$2 sm:$0xff] }
 0x375   : > { %2023 = vst.msk [vmem:[#allocation2 + $0x178] sm:$0xff] %vm1938_vm10, %v1929_v4  ;;  %v2105_v24 = vmax.f32 %v2049_v42, %v2083_v39  ;;  %v2134_v5 = vld [vmem:[#allocation2 + $0x111] ss:$2 sm:$0xff]  ;;  %v2100_v4 = vmax.f32 %v2039_v37, %v2073_v2  ;;  %v2163_v42 = vmax.f32 %v4492_v1, %v2148_v27 }
 0x377   : > { %v2156_v11 = vmax.f32 %v2105_v24, %v2134_v5  ;;  %v2079_v24 = vld [vmem:[#allocation2 + $0xe0] ss:$2 sm:$0xff]  ;;  %v2151_v0 = vmax.f32 %v2100_v4, %v2124_v34 }
 0x378   : > { %v2103_v5 = vmax.f32 %v2045_v26, %v2079_v24 }
 0x379   : > { %v2167_v61 = vmax.f32 %v4511_v10, %v2156_v11 }
 0x37c   : > { %v2057_v60 = vld [vmem:[#allocation2 + $0x16f] ss:$2 sm:$0xff]  ;;  %v2091_v23 = vld [vmem:[#allocation2 + $0x170] ss:$2 sm:$0xff] }
 0x37d   : > { %v1881_v13 = vpop.f32.mrf.mxu1  ;;  %v2109_v7 = vmax.f32 %v2057_v60, %v2091_v23  ;;  %v2142_v32 = vld [vmem:[#allocation2 + $0x171] ss:$2 sm:$0xff]  ;;  %v2130_v23 = vld [vmem:[#allocation2 + $0xe1] ss:$2 sm:$0xff] }
 0x37e   : > { %2007 = vst.msk [vmem:[#allocation2 + $0xb8] sm:$0xff] %vm1938_vm10, %v1881_v13 }
 0x37f   : > { %v2160_v58 = vmax.f32 %v2109_v7, %v2142_v32 }
 0x381   : > { %v2169_v13 = vmax.f32 %v2159_v22, %v2160_v58 }
 0x385   : > { %v2041_v35 = vld [vmem:[#allocation2 + $0xaf] ss:$2 sm:$0xff]  ;;  %v2075_v19 = vld [vmem:[#allocation2 + $0xb0] ss:$2 sm:$0xff] }
 0x386   : > { %v2101_v39 = vmax.f32 %v2041_v35, %v2075_v19  ;;  %v2126_v14 = vld [vmem:[#allocation2 + $0xb1] ss:$2 sm:$0xff] }
 0x388   : > { %v2152_v45 = vmax.f32 %v2101_v39, %v2126_v14 }
 0x38b   : > { %v1908_v36 = vpop.f32.mrf.mxu2  ;;  %v1932_v30 = vpop.f32.mrf.mxu3 }
 0x38c   : > { %2016 = vst.msk [vmem:[#allocation2 + $0x128] sm:$0xff] %vm1938_vm10, %v1908_v36 }
 0x38d   : > { %2024 = vst.msk [vmem:[#allocation2 + $0x188] sm:$0xff] %vm1938_vm10, %v1932_v30 }
 0x38f   : > { %v1884_v56 = vpop.f32.mrf.mxu1 }
 0x390   : > { %2008 = vst.msk [vmem:[#allocation2 + $0xc8] sm:$0xff] %vm1938_vm10, %v1884_v56  ;;  %v2150_v56 = vmax.f32 %v2099_v54, %v2122_v47 }
 0x394   : > { %v1860_v49 = vpop.f32.mrf.mxu0 }
 0x395   : > { %2000 = vst.msk [vmem:[#allocation2 + $0x68] sm:$0xff] %vm1938_vm10, %v1860_v49 }
 0x3a4   : > { %v1911_v15 = vpop.f32.mrf.mxu2 }
 0x3a5   : > { %2017 = vst.msk [vmem:[#allocation2 + $0x130] sm:$0xff] %vm1938_vm10, %v1911_v15 }
 0x3ac   : > { %v2051_v63 = vld [vmem:[#allocation2 + $0x127] ss:$2 sm:$0xff]  ;;  %v2085_v20 = vld [vmem:[#allocation2 + $0x128] ss:$2 sm:$0xff]  ;;  %v1935_v9 = vpop.f32.mrf.mxu3 }
 0x3ad   : > { %v2106_v29 = vmax.f32 %v2051_v63, %v2085_v20  ;;  %2025 = vst.msk [vmem:[#allocation2 + $0x190] sm:$0xff] %vm1938_vm10, %v1935_v9  ;;  %v2136_v40 = vld [vmem:[#allocation2 + $0x129] ss:$2 sm:$0xff]  ;;  %v2154_v20 = vmax.f32 %v2103_v5, %v2130_v23  ;;  %v2165_v9 = vmax.f32 %v2151_v0, %v2152_v45 }
 0x3ae   : > { %v1863_v6 = vpop.f32.mrf.mxu0 }
 0x3af   : > { %v2157_v53 = vmax.f32 %v2106_v29, %v2136_v40  ;;  %2001 = vst.msk [vmem:[#allocation2 + $0x70] sm:$0xff] %vm1938_vm10, %v1863_v6 }
 0x3b1   : > { %v2168_v8 = vmax.f32 %v2157_v53, %v2158_v38  ;;  %v2175_v16 = vmax.f32 %v2167_v61, %v2157_v53 }
 0x3b3   : > { %v2176_v41 = vmax.f32 %v2168_v8, %v2159_v22  ;;  %2183 = vst.msk [vmem:[%s4496_s25 + $0x28] sm:$0xff] %vm1938_vm10, %v2175_v16 }
 0x3b4   : > { %v2059_v62 = vld [vmem:[#allocation2 + $0x187] ss:$2 sm:$0xff]  ;;  %v2093_v43 = vld [vmem:[#allocation2 + $0x188] ss:$2 sm:$0xff] }
 0x3b5   : > { %2184 = vst.msk [vmem:[%s4496_s25 + $0x30] sm:$0xff] %vm1938_vm10, %v2176_v41  ;;  %v2110_v3 = vmax.f32 %v2059_v62, %v2093_v43  ;;  %v1887_v55 = vpop.f32.mrf.mxu1  ;;  %v2144_v46 = vld [vmem:[#allocation2 + $0x189] ss:$2 sm:$0xff] }
 0x3b6   : > { %v2035_v18 = vld [vmem:[#allocation2 + $0x67] ss:$2 sm:$0xff]  ;;  %v2069_v48 = vld [vmem:[#allocation2 + $0x68] ss:$2 sm:$0xff]  ;;  %2009 = vst.msk [vmem:[#allocation2 + $0xd0] sm:$0xff] %vm1938_vm10, %v1887_v55 }
 0x3b7   : > { %v2161_v36 = vmax.f32 %v2110_v3, %v2144_v46  ;;  %v2098_v30 = vmax.f32 %v2035_v18, %v2069_v48  ;;  %v2120_v49 = vld [vmem:[#allocation2 + $0x69] ss:$2 sm:$0xff] }
 0x3b9   : > { %v2177_v15 = vmax.f32 %v2169_v13, %v2161_v36  ;;  %v2149_v51 = vmax.f32 %v2098_v30, %v2120_v49 }
 0x3bb   : > { %2185 = vst.msk [vmem:[%s4496_s25 + $0x38] sm:$0xff] %vm1938_vm10, %v2177_v15  ;;  %v2164_v44 = vmax.f32 %v2149_v51, %v2150_v56  ;;  %v2171_v52 = vmax.f32 %v2163_v42, %v2149_v51 }
 0x3bd   : > { %v2172_v28 = vmax.f32 %v2164_v44, %v2151_v0  ;;  %2179 = vst.msk [vmem:[%s4496_s25 + $0x8] sm:$0xff] %vm1938_vm10, %v2171_v52  ;;  %v2043_v1 = vld [vmem:[#allocation2 + $0xc7] ss:$2 sm:$0xff]  ;;  %v2077_v11 = vld [vmem:[#allocation2 + $0xc8] ss:$2 sm:$0xff] }
 0x3be   : > { %v2102_v60 = vmax.f32 %v2043_v1, %v2077_v11  ;;  %v2128_v63 = vld [vmem:[#allocation2 + $0xc9] ss:$2 sm:$0xff] }
 0x3bf   : > { %2180 = vst.msk [vmem:[%s4496_s25 + $0x10] sm:$0xff] %vm1938_vm10, %v2172_v28 }
 0x3c0   : > { %v2153_v50 = vmax.f32 %v2102_v60, %v2128_v63 }
 0x3c2   : > { %v2166_v12 = vmax.f32 %v2153_v50, %v2154_v20  ;;  %v2173_v29 = vmax.f32 %v2165_v9, %v2153_v50 }
 0x3c4   : > { %v2174_v25 = vmax.f32 %v2166_v12, %v4511_v10  ;;  %2181 = vst.msk [vmem:[%s4496_s25 + $0x18] sm:$0xff] %vm1938_vm10, %v2173_v29 }
 0x3c6   : > { %2182 = vst.msk [vmem:[%s4496_s25 + $0x20] sm:$0xff] %vm1938_vm10, %v2174_v25 }
 0x3c7   : > { %2595 = shalt.err (!%p2592_p3)
}
 0x3c8   : > { %s2641_s17 = smov 128   ;;  %s2642_s21 = smov 8  }
 0x3c9   : > { %2514 = dma.vmem_to_hbm [thread:$0]  (%p2696_p5), %s2200_s13, 1024, %s2202_s30, %s2187_s3, %s2641_s17, %s2641_s17, %s2642_s21  }
 0x3ca PF: > { %p2520_p4 = scmp.ge.s32.totalorder %s2630_s12, 2  ;;  %s2216_s22 = sand.u32 1, %s2618_s9  }
 0x3cb   : > { %s2217_s23 = scalar_lea.sflag [#allocation4], %s2216_s22 }
 0x3cc   : > { %p2517_p7 = pnand %p2520_p4, %p2700_p6 }
 0x3ce   : > { %p2518_p8 = pneg %p2517_p7 }
 0x3d0   : > { %2613 = dma.done.wait (%p2518_p8), %s2217_s23, 1024  }
 0x3d1   : > { %2615 = vsyncadd (%p2518_p8), %s2217_s23, 4294966272  ;;  %p12_p9 = scmp.ge.s32.totalorder %s2683_s15, 4   ;;  %s4842_s9 = smov %s2622_s10 }
 0x3d2   : > { %s4843_s10 = smov %s2626_s11  ;;  %s4844_s11 = smov %s2694_s18 }
 0x3d3   : > { %s4845_s12 = smov %s2683_s15  ;;  %14 = sbr.rel (!%p12_p9) target bundleno = 3 (0x3), region = 117 }
 0x3d8   :  { %2223 = vsyncpa [#allocation4], 1 }
 0x3d9   :  { %2225 = vsyncpa [#allocation4 + $0x1], 1 }

</bundles_post_ra>
